<compile_context>
chip_gen: v5e
topology: v5e:2x2
jax: 0.10.0
libtpu: 0.0.40
codegen_flags: <defaults>
</compile_context>

<pallas_src>
import jax
import jax.numpy as jnp
from jax import lax
from jax.experimental import pallas as pl
from jax.experimental.pallas import tpu as pltpu


# ---------------------------------------------------------------------------
# Fused kernel (one image per grid step)
# ---------------------------------------------------------------------------

def _disc_fused_kernel(p1_ref, w1_ref, b1_ref, w2_ref, b2_ref, wf_ref, fb_ref,
                       out_ref):
    # ---- Conv1 (3->64, k4 s2 p1): MXU matmul on parity-ordered im2col patches
    a1 = jnp.dot(p1_ref[0], w1_ref[...], preferred_element_type=jnp.float32)
    a1 = a1 + b1_ref[...]
    y1 = jnp.maximum(a1, 0.2 * a1)                       # (256, 64) f32
    # rows are ordered ((oh%2)*2 + ow%2, oh//2, ow//2):
    #   y1g[2p+q][a, b, c] == act[2a+p, 2b+q, c]
    y1g = y1.astype(jnp.bfloat16).reshape(4, 8, 8, 64)

    def shift_rows(x, d):            # out[a] = x[a+d], out-of-range -> 0
        if d == 0:
            return x
        z = jnp.zeros((1, 8, 64), x.dtype)
        return (jnp.concatenate([x[1:], z], axis=0) if d > 0
                else jnp.concatenate([z, x[:-1]], axis=0))

    def shift_cols(x, d):            # out[:, b] = x[:, b+d], out-of-range -> 0
        if d == 0:
            return x
        z = jnp.zeros((8, 1, 64), x.dtype)
        return (jnp.concatenate([x[:, 1:], z], axis=1) if d > 0
                else jnp.concatenate([z, x[:, :-1]], axis=1))

    # tap (kh, kw) needs act[2u+kh-1, 2v+kw-1] -> parity group + (+-1, 0) shift
    TAP = {0: (1, -1), 1: (0, 0), 2: (1, 0), 3: (0, 1)}   # k -> (parity, shift)

    slabs = []
    for kh in range(4):
        p, da = TAP[kh]
        rs = [shift_rows(y1g[2 * p + 0], da),
              shift_rows(y1g[2 * p + 1], da)]             # shared over kw
        for kw in range(4):
            q, db = TAP[kw]
            slabs.append(shift_cols(rs[q], db))            # (8, 8, 64)

    # (oh*ow, kh*kw*c) feature order matches w2 row order.
    patches2 = jnp.concatenate(slabs, axis=-1).reshape(64, 1024)

    # ---- Conv2 (64->128, k4 s2 p1): one (64,1024)@(1024,128) MXU matmul
    a2 = jnp.dot(patches2, w2_ref[...], preferred_element_type=jnp.float32)
    a2 = a2 + b2_ref[...]
    y2 = jnp.maximum(a2, 0.2 * a2)                       # (64, 128) = (h*w, c)

    # ---- Flatten + Linear(8192->1) + Sigmoid as VPU mul + reduction
    prod = y2 * wf_ref[...]                              # (64, 128) f32
    logit = jnp.sum(prod, axis=1, keepdims=True)         # lane reduce    (64,1)
    logit = jnp.sum(logit, axis=0, keepdims=True)        # sublane reduce  (1,1)
    logit = logit + fb_ref[...]
    out_ref[...] = jax.nn.sigmoid(logit).reshape(1, 1, 1)


# ---------------------------------------------------------------------------
# Host-side layout plumbing (tiny tensors, pure reshape/transpose/pad)
# ---------------------------------------------------------------------------

def _conv1_patches(x_nhwc, k=4, s=2, p=1, k_pad=128):
    """im2col for conv1, (kh,kw,c) feature order, rows grouped by output parity
    ((oh%2, ow%2) outer), K zero-padded to k_pad.  Returns (B,256,k_pad) bf16."""
    B, H, W, C = x_nhwc.shape
    Ho = (H + 2 * p - k) // s + 1
    Wo = (W + 2 * p - k) // s + 1
    xp = jnp.pad(x_nhwc, ((0, 0), (p, p), (p, p), (0, 0)))
    cols = []
    for kh in range(k):
        for kw in range(k):
            cols.append(xp[:, kh:kh + s * Ho:s, kw:kw + s * Wo:s, :])
    patches = jnp.stack(cols, axis=3).reshape(B, Ho, Wo, k * k * C)
    pg = patches.reshape(B, Ho // 2, 2, Wo // 2, 2, k * k * C)
    pg = jnp.transpose(pg, (0, 2, 4, 1, 3, 5))   # (B, rp, cp, oh//2, ow//2, F)
    pg = pg.reshape(B, Ho * Wo, k * k * C)
    pg = jnp.pad(pg, ((0, 0), (0, 0), (0, k_pad - k * k * C)))
    return pg.astype(jnp.bfloat16)


def _conv_w_to_matmul(w_torch):
    # (O, C, Kh, Kw) -> (Kh, Kw, C, O) -> (Kh*Kw*C, O), matching im2col order.
    O, C, Kh, Kw = w_torch.shape
    return jnp.transpose(w_torch, (2, 3, 1, 0)).reshape(Kh * Kw * C, O)


def _fc_w_to_hw_c(w_torch, C, H, W):
    # torch flattens NCHW as (c,h,w); kernel features are (h*w, c).
    return jnp.transpose(w_torch.reshape(1, C, H, W), (2, 3, 1, 0)).reshape(H * W, C)


# ---------------------------------------------------------------------------
# Parameters (deterministic, synthetic) — torch layouts
# ---------------------------------------------------------------------------

def init_params(key, img_channels=3):
    k1, k2, k3, k4, k5, k6 = jax.random.split(key, 6)
    return {
        "conv1_w": jax.random.normal(k1, (64, img_channels, 4, 4), jnp.float32) * 0.05,
        "conv1_b": jax.random.normal(k2, (64,), jnp.float32) * 0.05,
        "conv2_w": jax.random.normal(k3, (128, 64, 4, 4), jnp.float32) * 0.02,
        "conv2_b": jax.random.normal(k4, (128,), jnp.float32) * 0.02,
        "fc_w": jax.random.normal(k5, (1, 128 * 8 * 8), jnp.float32) * 0.01,
        "fc_b": jax.random.normal(k6, (1,), jnp.float32) * 0.01,
    }


# ---------------------------------------------------------------------------
# Forward pass
# ---------------------------------------------------------------------------

def discriminator_forward(params, x_nchw):
    B = x_nchw.shape[0]
    x = jnp.transpose(x_nchw, (0, 2, 3, 1)).astype(jnp.float32)   # NHWC (B,32,32,3)

    p1 = _conv1_patches(x)                                        # (B, 256, 128) bf16
    w1 = _conv_w_to_matmul(params["conv1_w"])                     # (48, 64)
    w1 = jnp.pad(w1, ((0, 128 - w1.shape[0]), (0, 0))).astype(jnp.bfloat16)
    b1 = params["conv1_b"].reshape(1, 64).astype(jnp.float32)
    w2 = _conv_w_to_matmul(params["conv2_w"]).astype(jnp.bfloat16)  # (1024, 128)
    b2 = params["conv2_b"].reshape(1, 128).astype(jnp.float32)
    wf = _fc_w_to_hw_c(params["fc_w"], 128, 8, 8).astype(jnp.float32)  # (64, 128)
    fb = params["fc_b"].reshape(1, 1).astype(jnp.float32)

    out = pl.pallas_call(
        _disc_fused_kernel,
        out_shape=jax.ShapeDtypeStruct((B, 1, 1), jnp.float32),
        grid_spec=pltpu.PrefetchScalarGridSpec(
            num_scalar_prefetch=0,
            grid=(B,),
            in_specs=[
                pl.BlockSpec((1, 256, 128), lambda i: (i, 0, 0)),   # p1
                pl.BlockSpec((128, 64), lambda i: (0, 0)),          # w1
                pl.BlockSpec((1, 64), lambda i: (0, 0)),            # b1
                pl.BlockSpec((1024, 128), lambda i: (0, 0)),        # w2
                pl.BlockSpec((1, 128), lambda i: (0, 0)),           # b2
                pl.BlockSpec((64, 128), lambda i: (0, 0)),          # wf
                pl.BlockSpec((1, 1), lambda i: (0, 0)),             # fb
            ],
            out_specs=pl.BlockSpec((1, 1, 1), lambda i: (i, 0, 0)),
        ),
        compiler_params=pltpu.CompilerParams(
            dimension_semantics=("parallel",)),
    )(p1, w1, b1, w2, b2, wf, fb)
    return out.reshape(B, 1)


# ---------------------------------------------------------------------------
# Pure-JAX reference (for correctness check)
# ---------------------------------------------------------------------------

def discriminator_reference(params, x_nchw):
    x = x_nchw.astype(jnp.float32)
    y = lax.conv_general_dilated(x, params["conv1_w"], (2, 2), [(1, 1), (1, 1)],
                                 dimension_numbers=("NCHW", "OIHW", "NCHW"))
    y = y + params["conv1_b"].reshape(1, -1, 1, 1)
    y = jnp.where(y > 0, y, 0.2 * y)
    y = lax.conv_general_dilated(y, params["conv2_w"], (2, 2), [(1, 1), (1, 1)],
                                 dimension_numbers=("NCHW", "OIHW", "NCHW"))
    y = y + params["conv2_b"].reshape(1, -1, 1, 1)
    y = jnp.where(y > 0, y, 0.2 * y)
    feat = y.reshape(x.shape[0], -1)                     # (B, 128*8*8), (c,h,w) order
    logit = feat @ params["fc_w"].T + params["fc_b"]
    return jax.nn.sigmoid(logit)


# ---------------------------------------------------------------------------

if __name__ == "__main__":
    key = jax.random.PRNGKey(0)
    pkey, xkey = jax.random.split(key)

    B, C, H, W = 2, 3, 32, 32   # 32x32 input implied by Linear(128*8*8, 1)
    x = jax.random.normal(xkey, (B, C, H, W), jnp.float32)
    params = init_params(pkey, img_channels=C)

    out = jax.jit(discriminator_forward)(params, x)
    out = jax.block_until_ready(out)

    assert out.shape == (B, 1), out.shape
    assert bool(jnp.all((out >= 0.0) & (out <= 1.0)))

    ref = discriminator_reference(params, x)
    assert bool(jnp.allclose(out, ref, atol=2e-2)), (out, ref)
    print("KERNEL_OK")
</pallas_src>

<mosaic_0001>
module attributes {stable_mosaic.version = 11 : i64} {
  func.func @_disc_fused_kernel(%arg0: i32, %arg1: memref<1x256x128xbf16, #tpu.memory_space<vmem>>, %arg2: memref<128x64xbf16, #tpu.memory_space<vmem>>, %arg3: memref<1x64xf32, #tpu.memory_space<vmem>>, %arg4: memref<1024x128xbf16, #tpu.memory_space<vmem>>, %arg5: memref<1x128xf32, #tpu.memory_space<vmem>>, %arg6: memref<64x128xf32, #tpu.memory_space<vmem>>, %arg7: memref<1x1xf32, #tpu.memory_space<vmem>>, %arg8: memref<1x1x1xf32, #tpu.memory_space<vmem>>) attributes {dimension_semantics = [#tpu.dimension_semantics<parallel>], iteration_bounds = array<i64: 2>, scalar_prefetch = 0 : i64, scratch_operands = 0 : i64, tpu.core_type = #tpu.core_type<tc>, window_params = [{transform_indices = @transform_0, window_bounds = array<i64: 1, 256, 128>}, {pipeline_mode = #tpu.pipeline_mode<synchronous>, transform_indices = @transform_1, window_bounds = array<i64: 128, 64>}, {pipeline_mode = #tpu.pipeline_mode<synchronous>, transform_indices = @transform_2, window_bounds = array<i64: 1, 64>}, {pipeline_mode = #tpu.pipeline_mode<synchronous>, transform_indices = @transform_3, window_bounds = array<i64: 1024, 128>}, {pipeline_mode = #tpu.pipeline_mode<synchronous>, transform_indices = @transform_4, window_bounds = array<i64: 1, 128>}, {pipeline_mode = #tpu.pipeline_mode<synchronous>, transform_indices = @transform_5, window_bounds = array<i64: 64, 128>}, {pipeline_mode = #tpu.pipeline_mode<synchronous>, transform_indices = @transform_6, window_bounds = array<i64: 1, 1>}, {transform_indices = @transform_7, window_bounds = array<i64: 1, 1, 1>}]} {
    %c0 = arith.constant 0 : index
    %c0_0 = arith.constant 0 : index
    %c0_1 = arith.constant 0 : index
    %0 = vector.load %arg1[%c0, %c0_0, %c0_1] : memref<1x256x128xbf16, #tpu.memory_space<vmem>>, vector<1x256x128xbf16>
    %1 = vector.shape_cast %0 : vector<1x256x128xbf16> to vector<256x128xbf16>
    %c0_2 = arith.constant 0 : index
    %c0_3 = arith.constant 0 : index
    %2 = vector.load %arg2[%c0_2, %c0_3] : memref<128x64xbf16, #tpu.memory_space<vmem>>, vector<128x64xbf16>
    %cst = arith.constant dense<0.000000e+00> : vector<256x64xf32>
    %3 = tpu.matmul %1, %2, %cst {dimension_numbers = #tpu.dot_dimension_numbers<[1], [0], [0], [1], [0, 0, 1, 1], [], []>} : vector<256x128xbf16>, vector<128x64xbf16>, vector<256x64xf32> -> vector<256x64xf32>
    %c0_4 = arith.constant 0 : index
    %c0_5 = arith.constant 0 : index
    %4 = vector.load %arg3[%c0_4, %c0_5] : memref<1x64xf32, #tpu.memory_space<vmem>>, vector<1x64xf32>
    %5 = vector.broadcast %4 : vector<1x64xf32> to vector<256x64xf32>
    %6 = arith.addf %3, %5 : vector<256x64xf32>
    %cst_6 = arith.constant 2.000000e-01 : f32
    %7 = vector.broadcast %cst_6 : f32 to vector<256x64xf32>
    %8 = arith.mulf %7, %6 : vector<256x64xf32>
    %9 = arith.maximumf %6, %8 : vector<256x64xf32>
    %10 = arith.truncf %9 : vector<256x64xf32> to vector<256x64xbf16>
    %11 = vector.shape_cast %10 : vector<256x64xbf16> to vector<4x8x8x64xbf16>
    %12 = vector.extract_strided_slice %11 {offsets = [2, 0, 0, 0], sizes = [1, 8, 8, 64], strides = [1, 1, 1, 1]} : vector<4x8x8x64xbf16> to vector<1x8x8x64xbf16>
    %13 = vector.shape_cast %12 : vector<1x8x8x64xbf16> to vector<8x8x64xbf16>
    %cst_7 = arith.constant 0.000000e+00 : bf16
    %14 = vector.broadcast %cst_7 : bf16 to vector<1x8x64xbf16>
    %15 = vector.extract_strided_slice %13 {offsets = [0, 0, 0], sizes = [7, 8, 64], strides = [1, 1, 1]} : vector<8x8x64xbf16> to vector<7x8x64xbf16>
    %16 = tpu.concatenate %14, %15 in 0 : vector<1x8x64xbf16>, vector<7x8x64xbf16> -> vector<8x8x64xbf16>
    %17 = vector.extract_strided_slice %11 {offsets = [3, 0, 0, 0], sizes = [1, 8, 8, 64], strides = [1, 1, 1, 1]} : vector<4x8x8x64xbf16> to vector<1x8x8x64xbf16>
    %18 = vector.shape_cast %17 : vector<1x8x8x64xbf16> to vector<8x8x64xbf16>
    %cst_8 = arith.constant 0.000000e+00 : bf16
    %19 = vector.broadcast %cst_8 : bf16 to vector<1x8x64xbf16>
    %20 = vector.extract_strided_slice %18 {offsets = [0, 0, 0], sizes = [7, 8, 64], strides = [1, 1, 1]} : vector<8x8x64xbf16> to vector<7x8x64xbf16>
    %21 = tpu.concatenate %19, %20 in 0 : vector<1x8x64xbf16>, vector<7x8x64xbf16> -> vector<8x8x64xbf16>
    %cst_9 = arith.constant 0.000000e+00 : bf16
    %22 = vector.broadcast %cst_9 : bf16 to vector<8x1x64xbf16>
    %23 = vector.extract_strided_slice %21 {offsets = [0, 0, 0], sizes = [8, 7, 64], strides = [1, 1, 1]} : vector<8x8x64xbf16> to vector<8x7x64xbf16>
    %24 = tpu.concatenate %22, %23 in 1 : vector<8x1x64xbf16>, vector<8x7x64xbf16> -> vector<8x8x64xbf16>
    %cst_10 = arith.constant 0.000000e+00 : bf16
    %25 = vector.broadcast %cst_10 : bf16 to vector<8x1x64xbf16>
    %26 = vector.extract_strided_slice %16 {offsets = [0, 1, 0], sizes = [8, 7, 64], strides = [1, 1, 1]} : vector<8x8x64xbf16> to vector<8x7x64xbf16>
    %27 = tpu.concatenate %26, %25 in 1 : vector<8x7x64xbf16>, vector<8x1x64xbf16> -> vector<8x8x64xbf16>
    %28 = vector.extract_strided_slice %11 {offsets = [0, 0, 0, 0], sizes = [1, 8, 8, 64], strides = [1, 1, 1, 1]} : vector<4x8x8x64xbf16> to vector<1x8x8x64xbf16>
    %29 = vector.shape_cast %28 : vector<1x8x8x64xbf16> to vector<8x8x64xbf16>
    %30 = vector.extract_strided_slice %11 {offsets = [1, 0, 0, 0], sizes = [1, 8, 8, 64], strides = [1, 1, 1, 1]} : vector<4x8x8x64xbf16> to vector<1x8x8x64xbf16>
    %31 = vector.shape_cast %30 : vector<1x8x8x64xbf16> to vector<8x8x64xbf16>
    %cst_11 = arith.constant 0.000000e+00 : bf16
    %32 = vector.broadcast %cst_11 : bf16 to vector<8x1x64xbf16>
    %33 = vector.extract_strided_slice %31 {offsets = [0, 0, 0], sizes = [8, 7, 64], strides = [1, 1, 1]} : vector<8x8x64xbf16> to vector<8x7x64xbf16>
    %34 = tpu.concatenate %32, %33 in 1 : vector<8x1x64xbf16>, vector<8x7x64xbf16> -> vector<8x8x64xbf16>
    %cst_12 = arith.constant 0.000000e+00 : bf16
    %35 = vector.broadcast %cst_12 : bf16 to vector<8x1x64xbf16>
    %36 = vector.extract_strided_slice %29 {offsets = [0, 1, 0], sizes = [8, 7, 64], strides = [1, 1, 1]} : vector<8x8x64xbf16> to vector<8x7x64xbf16>
    %37 = tpu.concatenate %36, %35 in 1 : vector<8x7x64xbf16>, vector<8x1x64xbf16> -> vector<8x8x64xbf16>
    %38 = vector.extract_strided_slice %11 {offsets = [2, 0, 0, 0], sizes = [1, 8, 8, 64], strides = [1, 1, 1, 1]} : vector<4x8x8x64xbf16> to vector<1x8x8x64xbf16>
    %39 = vector.shape_cast %38 : vector<1x8x8x64xbf16> to vector<8x8x64xbf16>
    %40 = vector.extract_strided_slice %11 {offsets = [3, 0, 0, 0], sizes = [1, 8, 8, 64], strides = [1, 1, 1, 1]} : vector<4x8x8x64xbf16> to vector<1x8x8x64xbf16>
    %41 = vector.shape_cast %40 : vector<1x8x8x64xbf16> to vector<8x8x64xbf16>
    %cst_13 = arith.constant 0.000000e+00 : bf16
    %42 = vector.broadcast %cst_13 : bf16 to vector<8x1x64xbf16>
    %43 = vector.extract_strided_slice %41 {offsets = [0, 0, 0], sizes = [8, 7, 64], strides = [1, 1, 1]} : vector<8x8x64xbf16> to vector<8x7x64xbf16>
    %44 = tpu.concatenate %42, %43 in 1 : vector<8x1x64xbf16>, vector<8x7x64xbf16> -> vector<8x8x64xbf16>
    %cst_14 = arith.constant 0.000000e+00 : bf16
    %45 = vector.broadcast %cst_14 : bf16 to vector<8x1x64xbf16>
    %46 = vector.extract_strided_slice %39 {offsets = [0, 1, 0], sizes = [8, 7, 64], strides = [1, 1, 1]} : vector<8x8x64xbf16> to vector<8x7x64xbf16>
    %47 = tpu.concatenate %46, %45 in 1 : vector<8x7x64xbf16>, vector<8x1x64xbf16> -> vector<8x8x64xbf16>
    %48 = vector.extract_strided_slice %11 {offsets = [0, 0, 0, 0], sizes = [1, 8, 8, 64], strides = [1, 1, 1, 1]} : vector<4x8x8x64xbf16> to vector<1x8x8x64xbf16>
    %49 = vector.shape_cast %48 : vector<1x8x8x64xbf16> to vector<8x8x64xbf16>
    %cst_15 = arith.constant 0.000000e+00 : bf16
    %50 = vector.broadcast %cst_15 : bf16 to vector<1x8x64xbf16>
    %51 = vector.extract_strided_slice %49 {offsets = [1, 0, 0], sizes = [7, 8, 64], strides = [1, 1, 1]} : vector<8x8x64xbf16> to vector<7x8x64xbf16>
    %52 = tpu.concatenate %51, %50 in 0 : vector<7x8x64xbf16>, vector<1x8x64xbf16> -> vector<8x8x64xbf16>
    %53 = vector.extract_strided_slice %11 {offsets = [1, 0, 0, 0], sizes = [1, 8, 8, 64], strides = [1, 1, 1, 1]} : vector<4x8x8x64xbf16> to vector<1x8x8x64xbf16>
    %54 = vector.shape_cast %53 : vector<1x8x8x64xbf16> to vector<8x8x64xbf16>
    %cst_16 = arith.constant 0.000000e+00 : bf16
    %55 = vector.broadcast %cst_16 : bf16 to vector<1x8x64xbf16>
    %56 = vector.extract_strided_slice %54 {offsets = [1, 0, 0], sizes = [7, 8, 64], strides = [1, 1, 1]} : vector<8x8x64xbf16> to vector<7x8x64xbf16>
    %57 = tpu.concatenate %56, %55 in 0 : vector<7x8x64xbf16>, vector<1x8x64xbf16> -> vector<8x8x64xbf16>
    %cst_17 = arith.constant 0.000000e+00 : bf16
    %58 = vector.broadcast %cst_17 : bf16 to vector<8x1x64xbf16>
    %59 = vector.extract_strided_slice %57 {offsets = [0, 0, 0], sizes = [8, 7, 64], strides = [1, 1, 1]} : vector<8x8x64xbf16> to vector<8x7x64xbf16>
    %60 = tpu.concatenate %58, %59 in 1 : vector<8x1x64xbf16>, vector<8x7x64xbf16> -> vector<8x8x64xbf16>
    %cst_18 = arith.constant 0.000000e+00 : bf16
    %61 = vector.broadcast %cst_18 : bf16 to vector<8x1x64xbf16>
    %62 = vector.extract_strided_slice %52 {offsets = [0, 1, 0], sizes = [8, 7, 64], strides = [1, 1, 1]} : vector<8x8x64xbf16> to vector<8x7x64xbf16>
    %63 = tpu.concatenate %62, %61 in 1 : vector<8x7x64xbf16>, vector<8x1x64xbf16> -> vector<8x8x64xbf16>
    %64 = tpu.concatenate %24, %16, %21, %27, %34, %29, %31, %37, %44, %39, %41, %47, %60, %52, %57, %63 in 2 : vector<8x8x64xbf16>, vector<8x8x64xbf16>, vector<8x8x64xbf16>, vector<8x8x64xbf16>, vector<8x8x64xbf16>, vector<8x8x64xbf16>, vector<8x8x64xbf16>, vector<8x8x64xbf16>, vector<8x8x64xbf16>, vector<8x8x64xbf16>, vector<8x8x64xbf16>, vector<8x8x64xbf16>, vector<8x8x64xbf16>, vector<8x8x64xbf16>, vector<8x8x64xbf16>, vector<8x8x64xbf16> -> vector<8x8x1024xbf16>
    %65 = vector.shape_cast %64 : vector<8x8x1024xbf16> to vector<64x1024xbf16>
    %c0_19 = arith.constant 0 : index
    %c0_20 = arith.constant 0 : index
    %66 = vector.load %arg4[%c0_19, %c0_20] : memref<1024x128xbf16, #tpu.memory_space<vmem>>, vector<1024x128xbf16>
    %cst_21 = arith.constant dense<0.000000e+00> : vector<64x128xf32>
    %67 = tpu.matmul %65, %66, %cst_21 {dimension_numbers = #tpu.dot_dimension_numbers<[1], [0], [0], [1], [0, 0, 1, 1], [], []>} : vector<64x1024xbf16>, vector<1024x128xbf16>, vector<64x128xf32> -> vector<64x128xf32>
    %c0_22 = arith.constant 0 : index
    %c0_23 = arith.constant 0 : index
    %68 = vector.load %arg5[%c0_22, %c0_23] : memref<1x128xf32, #tpu.memory_space<vmem>>, vector<1x128xf32>
    %69 = vector.broadcast %68 : vector<1x128xf32> to vector<64x128xf32>
    %70 = arith.addf %67, %69 : vector<64x128xf32>
    %cst_24 = arith.constant 2.000000e-01 : f32
    %71 = vector.broadcast %cst_24 : f32 to vector<64x128xf32>
    %72 = arith.mulf %71, %70 : vector<64x128xf32>
    %73 = arith.maximumf %70, %72 : vector<64x128xf32>
    %c0_25 = arith.constant 0 : index
    %c0_26 = arith.constant 0 : index
    %74 = vector.load %arg6[%c0_25, %c0_26] : memref<64x128xf32, #tpu.memory_space<vmem>>, vector<64x128xf32>
    %75 = arith.mulf %73, %74 : vector<64x128xf32>
    %cst_27 = arith.constant dense<0.000000e+00> : vector<64xf32>
    %76 = vector.multi_reduction <add>, %75, %cst_27 [1] : vector<64x128xf32> to vector<64xf32>
    %77 = vector.shape_cast %76 : vector<64xf32> to vector<64x1xf32>
    %cst_28 = arith.constant dense<0.000000e+00> : vector<1xf32>
    %78 = vector.multi_reduction <add>, %77, %cst_28 [0] : vector<64x1xf32> to vector<1xf32>
    %79 = vector.shape_cast %78 : vector<1xf32> to vector<1x1xf32>
    %c0_29 = arith.constant 0 : index
    %c0_30 = arith.constant 0 : index
    %80 = vector.load %arg7[%c0_29, %c0_30] : memref<1x1xf32, #tpu.memory_space<vmem>>, vector<1x1xf32>
    %81 = arith.addf %79, %80 : vector<1x1xf32>
    %82 = arith.negf %81 : vector<1x1xf32>
    %83 = math.exp %82 : vector<1x1xf32>
    %cst_31 = arith.constant 1.000000e+00 : f32
    %84 = vector.broadcast %cst_31 : f32 to vector<1x1xf32>
    %85 = arith.addf %84, %83 : vector<1x1xf32>
    %86 = arith.divf %84, %85 : vector<1x1xf32>
    %87 = vector.shape_cast %86 : vector<1x1xf32> to vector<1x1x1xf32>
    %c0_32 = arith.constant 0 : index
    %c0_33 = arith.constant 0 : index
    %c0_34 = arith.constant 0 : index
    %88 = vector.load %arg8[%c0_32, %c0_33, %c0_34] : memref<1x1x1xf32, #tpu.memory_space<vmem>>, vector<1x1x1xf32>
    tpu.vector_store %arg8[%c0_32, %c0_33, %c0_34], %87 {strides = array<i32>} : memref<1x1x1xf32, #tpu.memory_space<vmem>>, vector<1x1x1xf32>,
    return
  }
  func.func @transform_0(%arg0: i32) -> (i32, i32, i32) {
    %c0_i32 = arith.constant 0 : i32
    %c0_i32_0 = arith.constant 0 : i32
    %c0_i32_1 = arith.constant 0 : i32
    return %arg0, %c0_i32, %c0_i32_0 : i32, i32, i32
  }
  func.func @transform_1(%arg0: i32) -> (i32, i32) {
    %c0_i32 = arith.constant 0 : i32
    %c0_i32_0 = arith.constant 0 : i32
    %c0_i32_1 = arith.constant 0 : i32
    return %c0_i32, %c0_i32_0 : i32, i32
  }
  func.func @transform_2(%arg0: i32) -> (i32, i32) {
    %c0_i32 = arith.constant 0 : i32
    %c0_i32_0 = arith.constant 0 : i32
    %c0_i32_1 = arith.constant 0 : i32
    return %c0_i32, %c0_i32_0 : i32, i32
  }
  func.func @transform_3(%arg0: i32) -> (i32, i32) {
    %c0_i32 = arith.constant 0 : i32
    %c0_i32_0 = arith.constant 0 : i32
    %c0_i32_1 = arith.constant 0 : i32
    return %c0_i32, %c0_i32_0 : i32, i32
  }
  func.func @transform_4(%arg0: i32) -> (i32, i32) {
    %c0_i32 = arith.constant 0 : i32
    %c0_i32_0 = arith.constant 0 : i32
    %c0_i32_1 = arith.constant 0 : i32
    return %c0_i32, %c0_i32_0 : i32, i32
  }
  func.func @transform_5(%arg0: i32) -> (i32, i32) {
    %c0_i32 = arith.constant 0 : i32
    %c0_i32_0 = arith.constant 0 : i32
    %c0_i32_1 = arith.constant 0 : i32
    return %c0_i32, %c0_i32_0 : i32, i32
  }
  func.func @transform_6(%arg0: i32) -> (i32, i32) {
    %c0_i32 = arith.constant 0 : i32
    %c0_i32_0 = arith.constant 0 : i32
    %c0_i32_1 = arith.constant 0 : i32
    return %c0_i32, %c0_i32_0 : i32, i32
  }
  func.func @transform_7(%arg0: i32) -> (i32, i32, i32) {
    %c0_i32 = arith.constant 0 : i32
    %c0_i32_0 = arith.constant 0 : i32
    %c0_i32_1 = arith.constant 0 : i32
    return %arg0, %c0_i32, %c0_i32_0 : i32, i32, i32
  }
}

</mosaic_0001>

<bundles_post_ra>
// kernel: discriminator_forward.1
= control target key start
LH: loop header
LB: loop body
LE: loop exit
PB: predicated region body
PF: predicated region fallthrough
CT: control target
= control target key end

     0   :  { %s3041_s26 = smov 0   ;;  %s3977_s0 = inlined_call_operand.vmem [shape: bf16[2,256,128], index: 0, kind: input, shape index: {}]   ;;  %s3978_s1 = inlined_call_operand.vmem [shape: bf16[128,64], index: 1, kind: input, shape index: {}]   ;;  %s3979_s2 = inlined_call_operand.vmem [shape: f32[1,64], index: 2, kind: input, shape index: {}]   ;;  %s3980_s3 = inlined_call_operand.vmem [shape: bf16[1024,128], index: 3, kind: input, shape index: {}]   ;;  %s3981_s4 = inlined_call_operand.vmem [shape: f32[1,128], index: 4, kind: input, shape index: {}]   ;;  %s3982_s5 = inlined_call_operand.vmem [shape: f32[64,128], index: 5, kind: input, shape index: {}]   ;;  %s3983_s6 = inlined_call_operand.<no memory space> [shape: f32[1,1], index: 6, kind: input, shape index: {}]   ;;  %s3984_s7 = inlined_call_operand.vmem [shape: f32[2,1,1], index: 7, kind: output, shape index: {}]  }
   0x1   :  { %v12_v0 = vstv %s3983_s6 }
   0x2   :  { %13 = vst [vmem:[#allocation2] sm:$0x1] %v12_v0 }
   0x3 LB: > { %s2507_s27 = sadd.s32 4294967295, %s2994_s26   ;;  %p2511_p0 = scmp.ge.s32.totalorder %s2994_s26, 1  ;;  %s2994_s26 = sphi %s3041_s26, %s19_s26  }
   0x4   : > { %p239_p1 = scmp.lt.s32.totalorder %s2994_s26, 3 }
   0x6   : > { %p240_p2 = pnand %p2511_p0, %p239_p1 }
   0x7   : > { %p269_p3 = scmp.lt.s32.totalorder (!%p240_p2), %s2507_s27, 1  ;;  %s2997_s24 = smov (!%p240_p2), 64  }
   0x8   : > { %243 = sbr.rel (%p240_p2) target bundleno = 919 (0x397), region = 48 }
   0xd   : > { %v2893_v1 = vld [vmem:[%s3978_s1 + $0x38] sm:$0xff]  ;;  %v2892_v2 = vld [vmem:[%s3978_s1 + $0x30] sm:$0xff]  ;;  %v2891_v3 = vld [vmem:[%s3978_s1 + $0x28] sm:$0xff]  ;;  %s3990_s27 = smov (!%p269_p3, %s2507_s27), 1  ;;  %vm793_vm0 = vcmask 1043456   ;;  %v2996_v37 = vmov 0  }
   0xe   : > { %474 = vmatpush.bf16.msra.mxu0 %v2893_v1  ;;  %2958 = vmatpush.bf16.msra.mxu3 %v2893_v1  ;;  %v2890_v4 = vld [vmem:[%s3978_s1 + $0x20] sm:$0xff]  ;;  %v2889_v5 = vld [vmem:[%s3978_s1 + $0x18] sm:$0xff]  ;;  %v2888_v6 = vld [vmem:[%s3978_s1 + $0x10] sm:$0xff]  ;;  %s2869_s18 = sshll.u32 %s3990_s27, 7  ;;  %vm794_vm1 = vsmask.f32 3328  ;;  %s276_s28 = scalar_lea.vmem %s3984_s7, %s3990_s27 }
   0xf   : > { %v2887_v7 = vld [vmem:[%s3978_s1 + $0x8] sm:$0xff]  ;;  %v2886_v8 = vld [vmem:[%s3978_s1] sm:$0xff]  ;;  %s3079_s23 = scalar_lea.vmem %s3977_s0, %s2869_s18  ;;  %v734_v38 = vrot.slane %v2996_v37, 1  ;;  %vm3123_vm2 = vmand %vm793_vm0, %vm794_vm1  ;;  %vm723_vm3 = vcmask 1040384   ;;  %vm724_vm4 = vsmask.f32 256 }
  0x10   : > { %v2870_v9 = vld [vmem:[%s3079_s23] sm:$0xff]  ;;  %v2871_v10 = vld [vmem:[%s3079_s23 + $0x8] sm:$0xff]  ;;  %v2872_v11 = vld [vmem:[%s3079_s23 + $0x10] sm:$0xff]  ;;  %vm1329_vm6 = vcmask 523264   ;;  %vm2458_vm9 = vcmask 0  }
  0x11   : > { %v2873_v12 = vld [vmem:[%s3079_s23 + $0x18] sm:$0xff]  ;;  %v2874_v13 = vld [vmem:[%s3079_s23 + $0x20] sm:$0xff]  ;;  %v2875_v14 = vld [vmem:[%s3079_s23 + $0x28] sm:$0xff]  ;;  %v796_v40 = vsel %vm3123_vm2, %v734_v38, 0 }
  0x12   : > { %475 = vmatpush.bf16.msra.mxu0 %v2892_v2  ;;  %2959 = vmatpush.bf16.msra.mxu3 %v2892_v2  ;;  %v2876_v15 = vld [vmem:[%s3079_s23 + $0x30] sm:$0xff]  ;;  %v2877_v16 = vld [vmem:[%s3079_s23 + $0x38] sm:$0xff]  ;;  %v2878_v17 = vld [vmem:[%s3079_s23 + $0x40] sm:$0xff]  ;;  %v2976_v41 = vpack.i.bf16 0, %v796_v40 }
  0x13   : > { %v2879_v20 = vld [vmem:[%s3079_s23 + $0x48] sm:$0xff]  ;;  %v2880_v23 = vld [vmem:[%s3079_s23 + $0x50] sm:$0xff]  ;;  %v2881_v26 = vld [vmem:[%s3079_s23 + $0x58] sm:$0xff] }
  0x14   : > { %v2882_v28 = vld [vmem:[%s3079_s23 + $0x60] sm:$0xff]  ;;  %v2883_v31 = vld [vmem:[%s3079_s23 + $0x68] sm:$0xff]  ;;  %v2884_v34 = vld [vmem:[%s3079_s23 + $0x70] sm:$0xff]  ;;  %2977 = vrot.lane.b32.xlu0 %v2976_v41, %s2997_s24 }
  0x15   : > { %v2885_v42 = vld [vmem:[%s3079_s23 + $0x78] sm:$0xff]  ;;  %v3140_v46 = vld [vmem:[%s3979_s2] ss:$0 sm:$0xff]  ;;  %vm3362_vm5 = vmand %vm723_vm3, %vm724_vm4 }
  0x16   : > { %476 = vmatpush.bf16.msra.mxu0 %v2891_v3  ;;  %2960 = vmatpush.bf16.msra.mxu3 %v2891_v3 }
  0x1a   : > { %477 = vmatpush.bf16.msra.mxu0 %v2890_v4  ;;  %2961 = vmatpush.bf16.msra.mxu3 %v2890_v4 }
  0x1e   : > { %478 = vmatpush.bf16.msra.mxu0 %v2889_v5  ;;  %2962 = vmatpush.bf16.msra.mxu3 %v2889_v5 }
  0x22   : > { %479 = vmatpush.bf16.msra.mxu0 %v2888_v6  ;;  %2963 = vmatpush.bf16.msra.mxu3 %v2888_v6 }
  0x26   : > { %480 = vmatpush.bf16.msra.mxu0 %v2887_v7  ;;  %2964 = vmatpush.bf16.msra.mxu3 %v2887_v7 }
  0x2a   : > { %481 = vmatpush.bf16.msra.mxu0 %v2886_v8  ;;  %2965 = vmatpush.bf16.msra.mxu3 %v2886_v8 }
  0x2d   : > { %482 = vmatmul.bf16.vlgmr.msra.gmra.mxu0 %v2870_v9  ;;  %542 = vmatmul.bf16.vlgmr.msra.gmra.mxu3 %v2882_v28 }
  0x3d   : > { %487 = vmatmul.bf16.gmra.mxu0 %v2871_v10  ;;  %547 = vmatmul.bf16.gmra.mxu3 %v2883_v31 }
  0x4d   : > { %492 = vmatmul.bf16.gmra.mxu0 %v2872_v11  ;;  %552 = vmatmul.bf16.gmra.mxu3 %v2884_v34 }
  0x5d   : > { %497 = vmatmul.bf16.gmra.mxu0 %v2873_v12  ;;  %557 = vmatmul.bf16.gmra.mxu3 %v2885_v42 }
  0x6d   : > { %502 = vmatmul.bf16.gmra.mxu0 %v2874_v13 }
  0x7d   : > { %507 = vmatmul.bf16.gmra.mxu0 %v2875_v14 }
  0x8d   : > { %512 = vmatmul.bf16.gmra.mxu0 %v2876_v15 }
  0x9d   : > { %517 = vmatmul.bf16.gmra.mxu0 %v2877_v16 }
  0xaa   : > { %v3090_v18 = vpop.f32.mrf.mxu0 }
  0xab   : > { %v484_v38 = vadd.f32 %v3140_v46, %v3090_v18 }
  0xad   : > { %522 = vmatmul.bf16.gmra.mxu0 %v2878_v17 }
  0xb2   : > { %v3092_v19 = vpop.f32.mrf.mxu0 }
  0xb3   : > { %v486_v18 = vadd.f32 %v3140_v46, %v3092_v19 }
  0xba   : > { %v3095_v21 = vpop.f32.mrf.mxu0 }
  0xbd   : > { %527 = vmatmul.bf16.gmra.mxu0 %v2879_v20 }
  0xc2   : > { %v3097_v22 = vpop.f32.mrf.mxu0 }
  0xca   : > { %v3100_v24 = vpop.f32.mrf.mxu0 }
  0xcd   : > { %532 = vmatmul.bf16.gmra.mxu0 %v2880_v23 }
  0xd2   : > { %v3102_v25 = vpop.f32.mrf.mxu0 }
  0xda   : > { %v3105_v27 = vpop.f32.mrf.mxu0 }
  0xdd   : > { %537 = vmatmul.bf16.gmra.mxu0 %v2881_v26 }
  0xe2   : > { %v3108_v29 = vpop.f32.mrf.mxu0 }
  0xea   : > { %v3110_v30 = vpop.f32.mrf.mxu0 }
  0xf2   : > { %v3113_v32 = vpop.f32.mrf.mxu0 }
  0xfa   : > { %v3115_v33 = vpop.f32.mrf.mxu0 }
 0x102   : > { %v3118_v35 = vpop.f32.mrf.mxu0 }
 0x10a   : > { %v3120_v36 = vpop.f32.mrf.mxu0 }
 0x112   : > { %v3131_v43 = vpop.f32.mrf.mxu0 }
 0x11a   : > { %v3133_v44 = vpop.f32.mrf.mxu0 }
 0x122   : > { %v3135_v45 = vpop.f32.mrf.mxu0 }
 0x12a   : > { %v523_v47 = vpop.f32.mrf.mxu0 }
 0x12b   : > { %v524_v48 = vadd.f32 %v3140_v46, %v523_v47 }
 0x12d   : > { %v579_v49 = vmul.f32 0.2, %v524_v48 }
 0x12f   : > { %v611_v50 = vmax.f32 %v524_v48, %v579_v49  ;;  %v563_v48 = vmul.f32 0.2, %v484_v38 }
 0x131   : > { %v3143_v51 = vpack.c.bf16 %v611_v50, %v611_v50 }
 0x132   : > { %v525_v52 = vpop.f32.mrf.mxu0 }
 0x133   : > { %v526_v53 = vadd.f32 %v3140_v46, %v525_v52  ;;  %1206 = vrot.lane.b32.xlu1 %v3143_v51, %s2997_s24  ;;  %v739_v54 = vshll.u32 %v3143_v51, 16  ;;  %v737_v56 = vshrl.u32 %v3143_v51, 16 }
 0x135   : > { %v580_v55 = vmul.f32 0.2, %v526_v53  ;;  %v741_v57 = vrot.slane %v739_v54, 1 }
 0x137   : > { %v612_v58 = vmax.f32 %v526_v53, %v580_v55  ;;  %v742_v59 = vor.u32 %v741_v57, %v737_v56  ;;  %v595_v56 = vmax.f32 %v484_v38, %v563_v48 }
 0x139   : > { %v3150_v60 = vpack.c.bf16 %v612_v58, %v612_v58  ;;  %v797_v61 = vsel %vm3123_vm2, %v742_v59, 0  ;;  %v564_v59 = vmul.f32 0.2, %v486_v18 }
 0x13a   : > { %v528_v62 = vpop.f32.mrf.mxu0  ;;  %1230 = vrot.lane.b32.xlu0 %v797_v61, %s2997_s24 }
 0x13b   : > { %v529_v63 = vadd.f32 %v3140_v46, %v528_v62  ;;  %v746_v0 = vshll.u32 %v3150_v60, 16  ;;  %v744_v2 = vshrl.u32 %v3150_v60, 16 }
 0x13d   : > { %v581_v1 = vmul.f32 0.2, %v529_v63  ;;  %v748_v3 = vrot.slane %v746_v0, 1 }
 0x13f   : > { %v613_v4 = vmax.f32 %v529_v63, %v581_v1  ;;  %v749_v5 = vor.u32 %v748_v3, %v744_v2  ;;  %v627_v63 = vpack.c.bf16 %v595_v56, %v595_v56  ;;  %v596_v2 = vmax.f32 %v486_v18, %v564_v59 }
 0x141   : > { %v3158_v6 = vpack.c.bf16 %v613_v4, %v613_v4  ;;  %v798_v7 = vsel %vm3123_vm2, %v749_v5, 0 }
 0x142   : > { %v530_v8 = vpop.f32.mrf.mxu0  ;;  %1232 = vrot.lane.b32.xlu1 %v798_v7, %s2997_s24  ;;  %v908_v7 = vunpack.c.l.b16 %v627_v63 }
 0x143   : > { %v531_v9 = vadd.f32 %v3140_v46, %v530_v8  ;;  %1210 = vrot.lane.b32.xlu0 %v3158_v6, %s2997_s24  ;;  %v753_v10 = vshll.u32 %v3158_v6, 16  ;;  %v751_v12 = vshrl.u32 %v3158_v6, 16  ;;  %v489_v8 = vadd.f32 %v3140_v46, %v3095_v21 }
 0x144   : > { %v491_v21 = vadd.f32 %v3140_v46, %v3097_v22  ;;  %v2901_v22 = vld [vmem:[%s3980_s3 + $0x38] sm:$0xff] }
 0x145   : > { %v582_v11 = vmul.f32 0.2, %v531_v9  ;;  %v755_v13 = vrot.slane %v753_v10, 1  ;;  %2144 = vmatpush.bf16.msra.mxu1 %v2901_v22 }
 0x146   : > { %v566_v38 = vmul.f32 0.2, %v491_v21 }
 0x147   : > { %v614_v14 = vmax.f32 %v531_v9, %v582_v11  ;;  %v756_v15 = vor.u32 %v755_v13, %v751_v12  ;;  %v628_v11 = vpack.c.bf16 %v596_v2, %v596_v2  ;;  %v2908_v2 = vld [vmem:[%s3980_s3 + $0x70] sm:$0xff] }
 0x149   : > { %v3168_v16 = vpack.c.bf16 %v614_v14, %v614_v14  ;;  %v799_v17 = vsel %vm3123_vm2, %v756_v15, 0  ;;  %v565_v14 = vmul.f32 0.2, %v489_v8  ;;  %v916_v15 = vpack.c.b16 %v908_v7, %v908_v7  ;;  %v2898_v7 = vld [vmem:[%s3980_s3 + $0x20] sm:$0xff] }
 0x14a   : > { %v533_v20 = vpop.f32.mrf.mxu0  ;;  %1234 = vrot.lane.b32.xlu2 %v799_v17, %s2997_s24 }
 0x14b   : > { %v534_v23 = vadd.f32 %v3140_v46, %v533_v20  ;;  %1212 = vrot.lane.b32.xlu0 %v3168_v16, %s2997_s24  ;;  %v760_v26 = vshll.u32 %v3168_v16, 16  ;;  %v758_v31 = vshrl.u32 %v3168_v16, 16  ;;  %v909_v20 = vunpack.c.l.b16 %v628_v11 }
 0x14d   : > { %v583_v28 = vmul.f32 0.2, %v534_v23  ;;  %v762_v34 = vrot.slane %v760_v26, 1 }
 0x14f   : > { %v615_v40 = vmax.f32 %v534_v23, %v583_v28  ;;  %v763_v41 = vor.u32 %v762_v34, %v758_v31  ;;  %v597_v28 = vmax.f32 %v489_v8, %v565_v14  ;;  %v927_v31 = vshll.u32 %v916_v15, 16 }
 0x151   : > { %v3180_v42 = vpack.c.bf16 %v615_v40, %v615_v40  ;;  %v800_v47 = vsel %vm3123_vm2, %v763_v41, 0  ;;  %v917_v41 = vpack.c.b16 %v909_v20, %v909_v20  ;;  %v929_v48 = vrot.slane %v927_v31, 1 }
 0x152   : > { %v535_v49 = vpop.f32.mrf.mxu0  ;;  %1208 = vrot.lane.b32.xlu2 %v3150_v60, %s2997_s24  ;;  %1236 = vrot.lane.b32.xlu1 %v800_v47, %s2997_s24  ;;  %v629_v47 = vpack.c.bf16 %v597_v28, %v597_v28  ;;  %v1102_v20 = vunpack.c.l.b16 %v3158_v6 }
 0x153   : > { %v536_v50 = vadd.f32 %v3140_v46, %v535_v49  ;;  %v767_v52 = vshll.u32 %v3180_v42, 16  ;;  %v765_v54 = vshrl.u32 %v3180_v42, 16  ;;  %v1100_v49 = vunpack.c.l.b16 %v3143_v51 }
 0x154   : > { %v934_v18 = vshll.u32 %v917_v41, 16  ;;  %v3276_v6 = vpack.c.b16 %v1102_v20, %v1102_v20 }
 0x155   : > { %v584_v53 = vmul.f32 0.2, %v536_v50  ;;  %v769_v55 = vrot.slane %v767_v52, 1  ;;  %v598_v52 = vmax.f32 %v491_v21, %v566_v38 }
 0x156   : > { %v936_v59 = vrot.slane %v934_v18, 1  ;;  %v2895_v18 = vld [vmem:[%s3980_s3 + $0x8] sm:$0xff] }
 0x157   : > { %v616_v57 = vmax.f32 %v536_v50, %v584_v53  ;;  %v770_v58 = vor.u32 %v769_v55, %v765_v54  ;;  %v925_v50 = vshrl.u32 %v916_v15, 16  ;;  %v2900_v53 = vld [vmem:[%s3980_s3 + $0x30] sm:$0xff]  ;;  %v910_v54 = vunpack.c.l.b16 %v629_v47 }
 0x158   : > { %v494_v55 = vadd.f32 %v3140_v46, %v3100_v24  ;;  %2145 = vmatpush.bf16.msra.mxu1 %v2900_v53  ;;  %v2909_v24 = vld [vmem:[%s3980_s3 + $0x78] sm:$0xff]  ;;  %v1103_v53 = vunpack.c.l.b16 %v3168_v16  ;;  %v2894_v16 = vld [vmem:[%s3980_s3] sm:$0xff] }
 0x159   : > { %v3192_v61 = vpack.c.bf16 %v616_v57, %v616_v57  ;;  %v801_v62 = vsel %vm3123_vm2, %v770_v58, 0  ;;  %v930_v56 = vor.u32 %v929_v48, %v925_v50  ;;  %v3230_v57 = vpack.c.b16 %v1100_v49, %v1100_v49  ;;  %2173 = vmatpush.bf16.msra.mxu2 %v2909_v24 }
 0x15a   : > { %v538_v0 = vpop.f32.mrf.mxu0  ;;  %1238 = vrot.lane.b32.xlu2 %v801_v62, %s2997_s24  ;;  %1214 = vrot.lane.b32.xlu1 %v3180_v42, %s2997_s24  ;;  %v630_v58 = vpack.c.bf16 %v598_v52, %v598_v52  ;;  %v567_v62 = vmul.f32 0.2, %v494_v55  ;;  %v918_v63 = vpack.c.b16 %v910_v54, %v910_v54  ;;  %v3300_v24 = vpack.c.b16 %v1103_v53, %v1103_v53 }
 0x15b   : > { %v539_v19 = vadd.f32 %v3140_v46, %v538_v0  ;;  %v774_v1 = vshll.u32 %v3192_v61, 16  ;;  %v772_v4 = vshrl.u32 %v3192_v61, 16  ;;  %v988_v51 = vsel %vm3123_vm2, %v930_v56, 0 }
 0x15c   : > { %v932_v0 = vshrl.u32 %v917_v41, 16  ;;  %v599_v8 = vmax.f32 %v494_v55, %v567_v62  ;;  %v939_v21 = vshrl.u32 %v918_v63, 16  ;;  %v501_v55 = vadd.f32 %v3140_v46, %v3108_v29 }
 0x15d   : > { %v585_v3 = vmul.f32 0.2, %v539_v19  ;;  %v776_v5 = vrot.slane %v774_v1, 1  ;;  %v1101_v1 = vunpack.c.l.b16 %v3150_v60  ;;  %2174 = vmatpush.bf16.msra.mxu2 %v2908_v2 }
 0x15e   : > { %v631_v14 = vpack.c.bf16 %v599_v8, %v599_v8 }
 0x15f   : > { %v617_v9 = vmax.f32 %v539_v19, %v585_v3  ;;  %v777_v10 = vor.u32 %v776_v5, %v772_v4  ;;  %v2899_v19 = vld [vmem:[%s3980_s3 + $0x28] sm:$0xff]  ;;  %v911_v3 = vunpack.c.l.b16 %v630_v58  ;;  %v496_v4 = vadd.f32 %v3140_v46, %v3102_v25 }
 0x160   : > { %v937_v5 = vor.u32 %v936_v59, %v932_v0  ;;  %2146 = vmatpush.bf16.msra.mxu1 %v2899_v19  ;;  %v912_v38 = vunpack.c.l.b16 %v631_v14  ;;  %v570_v0 = vmul.f32 0.2, %v501_v55  ;;  %v2902_v14 = vld [vmem:[%s3980_s3 + $0x40] sm:$0xff] }
 0x161   : > { %v3204_v12 = vpack.c.bf16 %v617_v9, %v617_v9  ;;  %v802_v13 = vsel %vm3123_vm2, %v777_v10, 0  ;;  %v941_v9 = vshll.u32 %v918_v63, 16  ;;  %v3253_v10 = vpack.c.b16 %v1101_v1, %v1101_v1 }
 0x162   : > { %1240 = vrot.lane.b32.xlu2 %v802_v13, %s2997_s24  ;;  %1216 = vrot.lane.b32.xlu1 %v3192_v61, %s2997_s24  ;;  %v568_v60 = vmul.f32 0.2, %v496_v4  ;;  %v989_v11 = vsel %vm3123_vm2, %v937_v5, 0  ;;  %v919_v13 = vpack.c.b16 %v911_v3, %v911_v3  ;;  %v920_v50 = vpack.c.b16 %v912_v38, %v912_v38  ;;  %v2903_v3 = vld [vmem:[%s3980_s3 + $0x48] sm:$0xff]  ;;  %v540_v20 = vpop.f32.mrf.mxu0 }
 0x163   : > { %v781_v17 = vshll.u32 %v3204_v12, 16  ;;  %v779_v23 = vshrl.u32 %v3204_v12, 16  ;;  %v943_v25 = vrot.slane %v941_v9, 1  ;;  %v1104_v5 = vunpack.c.l.b16 %v3180_v42 }
 0x164   : > { %2147 = vmatpush.bf16.msra.mxu1 %v2898_v7  ;;  %v600_v28 = vmax.f32 %v496_v4, %v568_v60  ;;  %v948_v31 = vshll.u32 %v919_v13, 16  ;;  %v946_v52 = vshrl.u32 %v919_v13, 16  ;;  %v955_v62 = vshll.u32 %v920_v50, 16 }
 0x165   : > { %v783_v26 = vrot.slane %v781_v17, 1  ;;  %v2897_v17 = vld [vmem:[%s3980_s3 + $0x18] sm:$0xff]  ;;  %v953_v7 = vshrl.u32 %v920_v50, 16  ;;  %v602_v8 = vmax.f32 %v501_v55, %v570_v0  ;;  %v541_v38 = vadd.f32 %v3140_v46, %v540_v20 }
 0x166   : > { %v632_v47 = vpack.c.bf16 %v600_v28, %v600_v28  ;;  %v950_v48 = vrot.slane %v948_v31, 1  ;;  %v957_v2 = vrot.slane %v955_v62, 1  ;;  %v2933_v28 = vld [vmem:[%s3980_s3 + $0x138] sm:$0xff]  ;;  %v3355_v62 = vpop.permute.xlu0 %2977 }
 0x167   : > { %v784_v34 = vor.u32 %v783_v26, %v779_v23  ;;  %v543_v23 = vpop.f32.mrf.mxu3  ;;  %v2906_v26 = vld [vmem:[%s3980_s3 + $0x60] sm:$0xff]  ;;  %v634_v42 = vpack.c.bf16 %v602_v8, %v602_v8  ;;  %v1126_v8 = vshll.u32 %v3253_v10, 16 }
 0x168   : > { %2148 = vmatpush.bf16.msra.mxu1 %v2897_v17  ;;  %v913_v54 = vunpack.c.l.b16 %v632_v47  ;;  %v951_v56 = vor.u32 %v950_v48, %v946_v52  ;;  %v586_v52 = vmul.f32 0.2, %v541_v38 }
 0x169   : > { %v803_v40 = vsel %vm3123_vm2, %v784_v34, 0  ;;  %v2896_v34 = vld [vmem:[%s3980_s3 + $0x10] sm:$0xff] }
 0x16a   : > { %1218 = vrot.lane.b32.xlu2 %v3204_v12, %s2997_s24  ;;  %1242 = vrot.lane.b32.xlu0 %v803_v40, %s2997_s24  ;;  %v499_v40 = vadd.f32 %v3140_v46, %v3105_v27  ;;  %v2905_v27 = vld [vmem:[%s3980_s3 + $0x58] sm:$0xff]  ;;  %v991_v29 = vsel %vm3123_vm2, %v951_v56, 0  ;;  %v921_v19 = vpack.c.b16 %v913_v54, %v913_v54  ;;  %v618_v0 = vmax.f32 %v541_v38, %v586_v52 }
 0x16b   : > { %1246 = vrot.lane.b32.xlu1 %v917_v41, %s2997_s24  ;;  %v944_v41 = vor.u32 %v943_v25, %v939_v21 }
 0x16c   : > { %2149 = vmatpush.bf16.msra.mxu1 %v2896_v34  ;;  %v569_v22 = vmul.f32 0.2, %v499_v40  ;;  %v962_v9 = vshll.u32 %v921_v19, 16  ;;  %v960_v34 = vshrl.u32 %v921_v19, 16 }
 0x16d   : > { %v990_v49 = vsel %vm3123_vm2, %v944_v41, 0  ;;  %v915_v41 = vunpack.c.l.b16 %v634_v42 }
 0x16e   : > { %v601_v58 = vmax.f32 %v499_v40, %v569_v22  ;;  %v964_v21 = vrot.slane %v962_v9, 1  ;;  %v1105_v40 = vunpack.c.l.b16 %v3192_v61  ;;  %v2932_v61 = vld [vmem:[%s3980_s3 + $0x130] sm:$0xff] }
 0x16f   : > { %v545_v59 = vpop.f32.mrf.mxu3  ;;  %v923_v56 = vpack.c.b16 %v915_v41, %v915_v41 }
 0x170   : > { %2150 = vmatpush.bf16.msra.mxu1 %v2895_v18  ;;  %v633_v1 = vpack.c.bf16 %v601_v58, %v601_v58  ;;  %v546_v47 = vadd.f32 %v3140_v46, %v545_v59  ;;  %v965_v48 = vor.u32 %v964_v21, %v960_v34  ;;  %v3344_v18 = vpack.c.b16 %v1105_v40, %v1105_v40 }
 0x171   : > { %v1128_v21 = vrot.slane %v1126_v8, 1  ;;  %v974_v38 = vshrl.u32 %v923_v56, 16  ;;  %v1117_v8 = vshrl.u32 %v3230_v57, 16 }
 0x172   : > { %1284 = vrot.lane.b32.xlu2 %v3230_v57, %s2997_s24  ;;  %1244 = vrot.lane.b32.xlu0 %v916_v15, %s2997_s24  ;;  %v2907_v15 = vld [vmem:[%s3980_s3 + $0x68] sm:$0xff]  ;;  %v914_v60 = vunpack.c.l.b16 %v633_v1  ;;  %v588_v53 = vmul.f32 0.2, %v546_v47  ;;  %v993_v55 = vsel %vm3123_vm2, %v965_v48, 0  ;;  %v1133_v48 = vshll.u32 %v3276_v6, 16 }
 0x173   : > { %1268 = vrot.lane.b32.xlu1 %v988_v51, %s2997_s24  ;;  %2175 = vmatpush.bf16.msra.mxu2 %v2907_v15  ;;  %v2904_v51 = vld [vmem:[%s3980_s3 + $0x50] sm:$0xff]  ;;  %v3318_v15 = vpack.c.b16 %v1104_v5, %v1104_v5  ;;  %v2980_v5 = vunpack.i.h.bf16 %v3355_v62 }
 0x174   : > { %2151 = vmatpush.bf16.msra.mxu1 %v2894_v16  ;;  %v662_v16 = vrot.slane %v2996_v37, 7  ;;  %v620_v1 = vmax.f32 %v546_v47, %v588_v53  ;;  %v1124_v47 = vshrl.u32 %v3253_v10, 16 }
 0x177   : > { %2176 = vmatpush.bf16.msra.mxu2 %v2906_v26  ;;  %v548_v17 = vpop.f32.mrf.mxu3  ;;  %v922_v26 = vpack.c.b16 %v914_v60, %v914_v60  ;;  %v726_v60 = vsel %vm3362_vm5, 0, %v662_v16 }
 0x178   : > { %v549_v54 = vadd.f32 %v3140_v46, %v548_v17 }
 0x179   : > { %v969_v22 = vshll.u32 %v922_v26, 16 }
 0x17a   : > { %1270 = vrot.lane.b32.xlu2 %v989_v11, %s2997_s24  ;;  %1286 = vrot.lane.b32.xlu0 %v3253_v10, %s2997_s24  ;;  %v958_v11 = vor.u32 %v957_v2, %v953_v7  ;;  %v589_v2 = vmul.f32 0.2, %v549_v54  ;;  %v2914_v10 = vld [vmem:[%s3980_s3 + $0xa0] sm:$0xff] }
 0x17b   : > { %1250 = vrot.lane.b32.xlu1 %v919_v13, %s2997_s24  ;;  %2177 = vmatpush.bf16.msra.mxu2 %v2905_v27  ;;  %v2917_v13 = vld [vmem:[%s3980_s3 + $0xb8] sm:$0xff]  ;;  %v971_v59 = vrot.slane %v969_v22, 1  ;;  %v1119_v22 = vshll.u32 %v3230_v57, 16  ;;  %v1145_v57 = vshrl.u32 %v3318_v15, 16 }
 0x17c   : > { %2202 = vmatpush.bf16.msrb.mxu3 %v2917_v13  ;;  %v2925_v27 = vld [vmem:[%s3980_s3 + $0xf8] sm:$0xff]  ;;  %v650_v13 = vpack.c.bf16 %v618_v0, %v618_v0  ;;  %v621_v17 = vmax.f32 %v549_v54, %v589_v2  ;;  %v1129_v54 = vor.u32 %v1128_v21, %v1124_v47 }
 0x17d   : > { %2231 = vmatpush.bf16.msrb.mxu1 %v2925_v27 }
 0x17e   : > { %v1107_v40 = vunpack.c.l.b16 %v650_v13 }
 0x17f   : > { %2178 = vmatpush.bf16.msra.mxu2 %v2904_v51  ;;  %v3352_v58 = vpop.f32.mrf.mxu3 }
 0x180   : > { %v3412_v0 = vpack.c.b16 %v1107_v40, %v1107_v40 }
 0x182   : > { %1288 = vrot.lane.b32.xlu2 %v3276_v6, %s2997_s24  ;;  %1248 = vrot.lane.b32.xlu0 %v918_v63, %s2997_s24  ;;  %v544_v63 = vadd.f32 %v3140_v46, %v543_v23  ;;  %v992_v23 = vsel %vm3123_vm2, %v958_v11, 0  ;;  %v2924_v11 = vld [vmem:[%s3980_s3 + $0xf0] sm:$0xff] }
 0x183   : > { %1272 = vrot.lane.b32.xlu1 %v990_v49, %s2997_s24  ;;  %2179 = vmatpush.bf16.msra.mxu2 %v2903_v3  ;;  %v976_v3 = vshll.u32 %v923_v56, 16 }
 0x184   : > { %v587_v4 = vmul.f32 0.2, %v544_v63  ;;  %2232 = vmatpush.bf16.msrb.mxu1 %v2924_v11 }
 0x185   : > { %v978_v42 = vrot.slane %v976_v3, 1 }
 0x186   : > { %v619_v25 = vmax.f32 %v544_v63, %v587_v4 }
 0x187   : > { %2180 = vmatpush.bf16.msra.mxu2 %v2902_v14  ;;  %v979_v27 = vor.u32 %v978_v42, %v974_v38 }
 0x188   : > { %v3328_v31 = vpack.c.bf16 %v619_v25, %v619_v25  ;;  %v3377_v25 = vpack.c.bf16 %v620_v1, %v620_v1 }
 0x189   : > { %v995_v1 = vsel %vm3123_vm2, %v979_v27, 0 }
 0x18a   : > { %1274 = vrot.lane.b32.xlu2 %v991_v29, %s2997_s24  ;;  %1290 = vrot.lane.b32.xlu0 %v3300_v24, %s2997_s24  ;;  %v667_v49 = vshrl.u32 %v3328_v31, 16  ;;  %v670_v63 = vshll.u32 %v3328_v31, 16  ;;  %v1106_v29 = vunpack.c.l.b16 %v3204_v12  ;;  %v2915_v12 = vld [vmem:[%s3980_s3 + $0xa8] sm:$0xff]  ;;  %v674_v52 = vshrl.u32 %v3377_v25, 16 }
 0x18b   : > { %1254 = vrot.lane.b32.xlu1 %v921_v19, %s2997_s24  ;;  %2260 = vmatpush.bf16.msrb.mxu2 %v2933_v28  ;;  %v967_v19 = vshrl.u32 %v922_v26, 16  ;;  %v2931_v28 = vld [vmem:[%s3980_s3 + $0x128] sm:$0xff] }
 0x18c   : > { %v669_v51 = vrot.slane %v667_v49, 7  ;;  %v3375_v14 = vpack.c.b16 %v1106_v29, %v1106_v29  ;;  %v3396_v49 = vpack.c.bf16 %v621_v17, %v621_v17  ;;  %v1135_v29 = vrot.slane %v1133_v48, 1 }
 0x18d   : > { %v972_v4 = vor.u32 %v971_v59, %v967_v19  ;;  %v2930_v59 = vld [vmem:[%s3980_s3 + $0x120] sm:$0xff]  ;;  %v1121_v19 = vrot.slane %v1119_v22, 1  ;;  %v676_v3 = vrot.slane %v674_v52, 7  ;;  %v551_v17 = vadd.f32 %v3140_v46, %v3352_v58  ;;  %v2913_v22 = vld [vmem:[%s3980_s3 + $0x98] sm:$0xff] }
 0x18e   : > { %v672_v9 = vor.u32 %v670_v63, %v669_v51  ;;  %v2979_v51 = vunpack.i.l.bf16 %v3355_v62  ;;  %v681_v16 = vshrl.u32 %v3396_v49, 16  ;;  %v1181_v62 = vsel %vm3123_vm2, %v1129_v54, 0 }
 0x18f   : > { %2261 = vmatpush.bf16.msrb.mxu2 %v2932_v61  ;;  %v994_v20 = vsel %vm3123_vm2, %v972_v4, 0  ;;  %v677_v4 = vshll.u32 %v3377_v25, 16  ;;  %v684_v13 = vshll.u32 %v3396_v49, 16  ;;  %v1168_v58 = vshll.u32 %v3412_v0, 16 }
 0x190   : > { %v727_v34 = vsel %vm3362_vm5, 0, %v672_v9  ;;  %v683_v11 = vrot.slane %v681_v16, 7 }
 0x192   : > { %1292 = vrot.lane.b32.xlu2 %v3318_v15, %s2997_s24  ;;  %1252 = vrot.lane.b32.xlu0 %v920_v50, %s2997_s24  ;;  %v2916_v50 = vld [vmem:[%s3980_s3 + $0xb0] sm:$0xff]  ;;  %v686_v27 = vor.u32 %v684_v13, %v683_v11 }
 0x193   : > { %1276 = vrot.lane.b32.xlu1 %v992_v23, %s2997_s24  ;;  %2203 = vmatpush.bf16.msrb.mxu3 %v2916_v50  ;;  %v1332_v23 = vsel %vm1329_vm6, %v726_v60, %v2980_v5  ;;  %v1131_v5 = vshrl.u32 %v3276_v6, 16  ;;  %v1189_v60 = vunpack.c.l.b16 %v2996_v37  ;;  %v1122_v6 = vor.u32 %v1121_v19, %v1117_v8  ;;  %v2912_v13 = vld [vmem:[%s3980_s3 + $0x90] sm:$0xff] }
 0x194   : > { %2262 = vmatpush.bf16.msrb.mxu2 %v2931_v28  ;;  %v1514_v61 = vunpack.c.l.b16 %v1332_v23  ;;  %v679_v23 = vor.u32 %v677_v4, %v676_v3  ;;  %v1154_v28 = vshll.u32 %v3344_v18, 16  ;;  %v729_v16 = vsel %vm3362_vm5, 0, %v686_v27 }
 0x195   : > { %v1136_v21 = vor.u32 %v1135_v29, %v1131_v5  ;;  %v1152_v29 = vshrl.u32 %v3344_v18, 16  ;;  %v1138_v19 = vshrl.u32 %v3300_v24, 16  ;;  %v1166_v5 = vshrl.u32 %v3412_v0, 16 }
 0x196   : > { %v728_v54 = vsel %vm3362_vm5, 0, %v679_v23 }
 0x197   : > { %2204 = vmatpush.bf16.msrb.mxu3 %v2915_v12  ;;  %v1355_v12 = vsel %vm1329_vm6, 0, %v2979_v51  ;;  %v1170_v51 = vrot.slane %v1168_v58, 1 }
 0x198   : > { %2263 = vmatpush.bf16.msrb.mxu2 %v2930_v59  ;;  %v1515_v47 = vunpack.c.l.b16 %v1355_v12 }
 0x19a   : > { %1278 = vrot.lane.b32.xlu2 %v993_v55, %s2997_s24  ;;  %1294 = vrot.lane.b32.xlu0 %v3344_v18, %s2997_s24  ;;  %v1147_v55 = vshll.u32 %v3318_v15, 16  ;;  %v2922_v15 = vld [vmem:[%s3980_s3 + $0xe0] sm:$0xff]  ;;  %v1171_v18 = vor.u32 %v1170_v51, %v1166_v5  ;;  %v504_v51 = vadd.f32 %v3140_v46, %v3110_v30 }
 0x19b   : > { %1258 = vrot.lane.b32.xlu1 %v923_v56, %s2997_s24  ;;  %v2923_v56 = vld [vmem:[%s3980_s3 + $0xe8] sm:$0xff]  ;;  %2205 = vmatpush.bf16.msrb.mxu3 %v2914_v10  ;;  %v1156_v10 = vrot.slane %v1154_v28, 1 }
 0x19c   : > { %2233 = vmatpush.bf16.msrb.mxu1 %v2923_v56  ;;  %v1149_v9 = vrot.slane %v1147_v55, 1  ;;  %v1182_v55 = vsel %vm3123_vm2, %v1136_v21, 0  ;;  %v1180_v56 = vsel %vm3123_vm2, %v1122_v6, 0 }
 0x19e   : > { %v1150_v48 = vor.u32 %v1149_v9, %v1145_v57  ;;  %v1157_v9 = vor.u32 %v1156_v10, %v1152_v29 }
 0x19f   : > { %2206 = vmatpush.bf16.msrb.mxu3 %v2913_v22 }
 0x1a0   : > { %2234 = vmatpush.bf16.msrb.mxu1 %v2922_v15  ;;  %v1184_v59 = vsel %vm3123_vm2, %v1150_v48, 0  ;;  %v1187_v48 = vsel %vm3123_vm2, %v1171_v18, 0 }
 0x1a2   : > { %1296 = vrot.lane.b32.xlu2 %v3375_v14, %s2997_s24  ;;  %1256 = vrot.lane.b32.xlu0 %v922_v26, %s2997_s24  ;;  %v553_v26 = vpop.f32.mrf.mxu3 }
 0x1a3   : > { %1280 = vrot.lane.b32.xlu1 %v994_v20, %s2997_s24  ;;  %v554_v52 = vadd.f32 %v3140_v46, %v553_v26  ;;  %2207 = vmatpush.bf16.msrb.mxu3 %v2912_v13 }
 0x1a4   : > { %v3391_v41 = vpop.permute.xlu2 %1234 }
 0x1a5   : > { %v1207_v50 = vpop.permute.xlu1 %1206  ;;  %v591_v3 = vmul.f32 0.2, %v554_v52  ;;  %v1361_v22 = vsel %vm1329_vm6, %v3396_v49, %v3391_v41  ;;  %v506_v41 = vadd.f32 %v3140_v46, %v3113_v32  ;;  %v2920_v32 = vld [vmem:[%s3980_s3 + $0xd0] sm:$0xff] }
 0x1a6   : > { %v1335_v53 = vsel %vm1329_vm6, %v727_v34, %v1207_v50  ;;  %v1140_v34 = vshll.u32 %v3300_v24, 16  ;;  %v3444_v50 = vpack.c.b16 %v1189_v60, %v1189_v60  ;;  %v1161_v24 = vshll.u32 %v3375_v14, 16 }
 0x1a7   : > { %v1522_v63 = vunpack.c.l.b16 %v1335_v53  ;;  %v623_v23 = vmax.f32 %v554_v52, %v591_v3  ;;  %v1535_v10 = vunpack.c.l.b16 %v1361_v22 }
 0x1a8   : > { %v1142_v26 = vrot.slane %v1140_v34, 1  ;;  %v1192_v21 = vshrl.u32 %v3444_v50, 16  ;;  %v1185_v34 = vsel %vm3123_vm2, %v1157_v9, 0  ;;  %v1163_v58 = vrot.slane %v1161_v24, 1 }
 0x1a9   : > { %v1696_v2 = vpack.c.b16 %v1522_v63, %v1514_v61  ;;  %v590_v61 = vmul.f32 0.2, %v551_v17  ;;  %v2929_v63 = vld [vmem:[%s3980_s3 + $0x118] sm:$0xff]  ;;  %v571_v9 = vmul.f32 0.2, %v504_v51 }
 0x1aa   : > { %1282 = vrot.lane.b32.xlu2 %v995_v1, %s2997_s24  ;;  %1298 = vrot.lane.b32.xlu0 %v3412_v0, %s2997_s24  ;;  %v3435_v40 = vpop.f32.mrf.mxu3  ;;  %v1195_v1 = vshll.u32 %v3444_v50, 16  ;;  %v1143_v11 = vor.u32 %v1142_v26, %v1138_v19  ;;  %v2928_v0 = vld [vmem:[%s3980_s3 + $0x110] sm:$0xff] }
 0x1ab   : > { %1310 = vrot.lane.b32.xlu1 %v1181_v62, %s2997_s24  ;;  %2152 = vmatmul.bf16.vlgmr.msra.gmra.mxu1 %v1696_v2  ;;  %v622_v2 = vmax.f32 %v551_v17, %v590_v61  ;;  %v2921_v17 = vld [vmem:[%s3980_s3 + $0xd8] sm:$0xff]  ;;  %v3503_v61 = vpack.c.bf16 %v623_v23, %v623_v23 }
 0x1ac   : > { %v1209_v42 = vpop.permute.xlu2 %1208  ;;  %v1231_v20 = vpop.permute.xlu0 %1230  ;;  %2264 = vmatpush.bf16.msrb.mxu2 %v2929_v63  ;;  %v1200_v6 = vrot.slane %v1195_v1, 1  ;;  %2235 = vmatpush.bf16.msrb.mxu1 %v2921_v17  ;;  %v2910_v17 = vld [vmem:[%s3980_s3 + $0x80] sm:$0xff] }
 0x1ad   : > { %v1357_v37 = vsel %vm1329_vm6, %v3328_v31, %v1231_v20  ;;  %v1338_v4 = vsel %vm1329_vm6, %v728_v54, %v1209_v42  ;;  %v3484_v57 = vpack.c.bf16 %v622_v2, %v622_v2  ;;  %v695_v26 = vshrl.u32 %v3503_v61, 16 }
 0x1ae   : > { %v1523_v38 = vunpack.c.l.b16 %v1357_v37  ;;  %v1528_v42 = vunpack.c.l.b16 %v1338_v4  ;;  %v1201_v27 = vor.u32 %v1200_v6, %v1192_v21  ;;  %v572_v2 = vmul.f32 0.2, %v506_v41 }
 0x1af   : > { %v688_v54 = vshrl.u32 %v3484_v57, 16  ;;  %v697_v4 = vrot.slane %v695_v26, 7  ;;  %v698_v5 = vshll.u32 %v3503_v61, 16 }
 0x1b0   : > { %v1697_v53 = vpack.c.b16 %v1523_v38, %v1515_v47  ;;  %2265 = vmatpush.bf16.msrb.mxu2 %v2928_v0  ;;  %v1183_v47 = vsel %vm3123_vm2, %v1143_v11, 0  ;;  %2236 = vmatpush.bf16.msrb.mxu1 %v2920_v32  ;;  %v604_v24 = vmax.f32 %v506_v41, %v572_v2  ;;  %v603_v0 = vmax.f32 %v504_v51, %v571_v9  ;;  %v2918_v51 = vld [vmem:[%s3980_s3 + $0xc0] sm:$0xff] }
 0x1b1   : > { %v690_v29 = vrot.slane %v688_v54, 7  ;;  %v700_v39 = vor.u32 %v698_v5, %v697_v4  ;;  %v511_v41 = vadd.f32 %v3140_v46, %v3118_v35  ;;  %v2941_v35 = vld [vmem:[%s3980_s3 + $0x178] sm:$0xff] }
 0x1b2   : > { %2181 = vmatmul.bf16.vlgmr.msra.gmra.mxu2 %v1697_v53  ;;  %1312 = vrot.lane.b32.xlu2 %v1182_v55, %s2997_s24  ;;  %v558_v37 = vpop.f32.mrf.mxu3  ;;  %v1159_v55 = vshrl.u32 %v3375_v14, 16  ;;  %v2911_v14 = vld [vmem:[%s3980_s3 + $0x88] sm:$0xff] }
 0x1b3   : > { %1308 = vrot.lane.b32.xlu0 %v1180_v56, %s2997_s24  ;;  %1316 = vrot.lane.b32.xlu1 %v1184_v59, %s2997_s24  ;;  %v559_v15 = vadd.f32 %v3140_v46, %v558_v37  ;;  %v556_v56 = vadd.f32 %v3140_v46, %v3435_v40  ;;  %v691_v40 = vshll.u32 %v3484_v57, 16 }
 0x1b4   : > { %v3467_v62 = vpop.permute.xlu2 %1238  ;;  %v1233_v60 = vpop.permute.xlu1 %1232  ;;  %v1164_v59 = vor.u32 %v1163_v58, %v1159_v55  ;;  %2208 = vmatpush.bf16.msrb.mxu3 %v2911_v14 }
 0x1b5   : > { %v1211_v8 = vpop.permute.xlu0 %1210  ;;  %v1359_v28 = vsel %vm1329_vm6, %v3377_v25, %v1233_v60  ;;  %v593_v63 = vmul.f32 0.2, %v559_v15  ;;  %v592_v30 = vmul.f32 0.2, %v556_v56  ;;  %v1365_v58 = vsel %vm1329_vm6, %v3503_v61, %v3467_v62 }
 0x1b6   : > { %v1341_v12 = vsel %vm1329_vm6, %v729_v16, %v1211_v8  ;;  %v1529_v52 = vunpack.c.l.b16 %v1359_v28  ;;  %v1203_v16 = vsel %vm3123_vm2, %v1201_v27, 0  ;;  %v1186_v3 = vsel %vm3123_vm2, %v1164_v59, 0  ;;  %v2927_v8 = vld [vmem:[%s3980_s3 + $0x108] sm:$0xff] }
 0x1b7   : > { %v1534_v20 = vunpack.c.l.b16 %v1341_v12  ;;  %v625_v60 = vmax.f32 %v559_v15, %v593_v63  ;;  %v693_v12 = vor.u32 %v691_v40, %v690_v29  ;;  %2266 = vmatpush.bf16.msrb.mxu2 %v2927_v8  ;;  %v624_v13 = vmax.f32 %v556_v56, %v592_v30 }
 0x1b8   : > { %v1705_v19 = vpack.c.b16 %v1535_v10, %v1529_v52  ;;  %2209 = vmatpush.bf16.msrb.mxu3 %v2910_v17  ;;  %v3547_v28 = vpack.c.bf16 %v604_v24, %v604_v24  ;;  %v1547_v56 = vunpack.c.l.b16 %v1365_v58  ;;  %v574_v30 = vmul.f32 0.2, %v511_v41 }
 0x1b9   : > { %v1704_v38 = vpack.c.b16 %v1534_v20, %v1528_v42  ;;  %v3538_v42 = vpack.c.bf16 %v625_v60, %v625_v60  ;;  %v2919_v20 = vld [vmem:[%s3980_s3 + $0xc8] sm:$0xff]  ;;  %v730_v6 = vsel %vm3362_vm5, 0, %v693_v12  ;;  %v1004_v12 = vunpack.c.l.b16 %v3328_v31 }
 0x1ba   : > { %1318 = vrot.lane.b32.xlu2 %v1185_v34, %s2997_s24  ;;  %2237 = vmatpush.bf16.msrb.mxu1 %v2919_v20  ;;  %v3549_v34 = vpack.c.bf16 %v624_v13, %v624_v13  ;;  %v813_v62 = vunpack.c.l.b16 %v3547_v28  ;;  %v606_v60 = vmax.f32 %v511_v41, %v574_v30  ;;  %v1005_v20 = vunpack.c.l.b16 %v3377_v25  ;;  %v2939_v30 = vld [vmem:[%s3980_s3 + $0x168] sm:$0xff] }
 0x1bb   : > { %1314 = vrot.lane.b32.xlu0 %v1183_v47, %s2997_s24  ;;  %1322 = vrot.lane.b32.xlu1 %v1187_v48, %s2997_s24  ;;  %v2926_v47 = vld [vmem:[%s3980_s3 + $0x100] sm:$0xff]  ;;  %v3556_v48 = vpack.c.bf16 %v603_v0, %v603_v0  ;;  %v709_v15 = vshrl.u32 %v3538_v42, 16  ;;  %v712_v32 = vshll.u32 %v3538_v42, 16 }
 0x1bc   : > { %2157 = vmatmul.bf16.gmra.mxu1 %v1704_v38  ;;  %v3505_v53 = vpop.permute.xlu2 %1240  ;;  %v731_v38 = vsel %vm3362_vm5, 0, %v700_v39  ;;  %v702_v55 = vshrl.u32 %v3549_v34, 16  ;;  %2267 = vmatpush.bf16.msrb.mxu2 %v2926_v47  ;;  %v705_v2 = vshll.u32 %v3549_v34, 16  ;;  %v2949_v47 = vld [vmem:[%s3980_s3 + $0x1b8] sm:$0xff] }
 0x1bd   : > { %v1213_v23 = vpop.permute.xlu0 %1212  ;;  %v812_v63 = vunpack.c.l.b16 %v3556_v48  ;;  %v711_v14 = vrot.slane %v709_v15, 7  ;;  %2289 = vmatpush.bf16.msra.mxu3 %v2941_v35  ;;  %v2956_v15 = vld [vmem:[%s3980_s3 + $0x1f0] sm:$0xff] }
 0x1be   : > { %v1344_v22 = vsel %vm1329_vm6, %v730_v6, %v1213_v23  ;;  %2238 = vmatpush.bf16.msrb.mxu1 %v2918_v51  ;;  %v3592_v6 = vpack.c.bf16 %v606_v60, %v606_v60  ;;  %v1012_v23 = vpack.c.b16 %v1004_v12, %v1004_v12  ;;  %v1013_v51 = vpack.c.b16 %v1005_v20, %v1005_v20 }
 0x1bf   : > { %v1540_v59 = vunpack.c.l.b16 %v1344_v22  ;;  %v714_v5 = vor.u32 %v712_v32, %v711_v14 }
 0x1c0   : > { %v1024_v60 = vshll.u32 %v1012_v23, 16 }
 0x1c1   : > { %v733_v17 = vsel %vm3362_vm5, 0, %v714_v5 }
 0x1c2   : > { %2186 = vmatmul.bf16.gmra.mxu2 %v1705_v19  ;;  %1327 = vrot.lane.b32.xlu2 %v1203_v16, %s2997_s24  ;;  %v509_v16 = vadd.f32 %v3140_v46, %v3115_v33  ;;  %v704_v19 = vrot.slane %v702_v55, 7  ;;  %v2957_v33 = vld [vmem:[%s3980_s3 + $0x1f8] sm:$0xff]  ;;  %v820_v46 = vpack.c.b16 %v812_v63, %v812_v63  ;;  %v1021_v63 = vshrl.u32 %v1012_v23, 16 }
 0x1c3   : > { %1320 = vrot.lane.b32.xlu0 %v1186_v3, %s2997_s24  ;;  %v821_v3 = vpack.c.b16 %v813_v62, %v813_v62  ;;  %2347 = vmatpush.bf16.msra.mxu2 %v2957_v33  ;;  %v3614_v62 = vld [vmem:[%s3979_s2] ss:$0 sm:$0xff] }
 0x1c4   : > { %v3533_v11 = vpop.permute.xlu2 %1218  ;;  %v1237_v18 = vpop.permute.xlu1 %1236  ;;  %v573_v4 = vmul.f32 0.2, %v509_v16  ;;  %v707_v8 = vor.u32 %v705_v2, %v704_v19  ;;  %v829_v13 = vshrl.u32 %v820_v46, 16  ;;  %v832_v58 = vshll.u32 %v820_v46, 16  ;;  %2318 = vmatpush.bf16.msra.mxu1 %v2949_v47 }
 0x1c5   : > { %v1363_v37 = vsel %vm1329_vm6, %v3484_v57, %v1237_v18  ;;  %v836_v24 = vshrl.u32 %v821_v3, 16  ;;  %v1353_v55 = vsel %vm1329_vm6, %v733_v17, %v3533_v11  ;;  %v516_v11 = vadd.f32 %v3614_v62, %v3131_v43  ;;  %v2948_v43 = vld [vmem:[%s3980_s3 + $0x1b0] sm:$0xff] }
 0x1c6   : > { %v1541_v27 = vunpack.c.l.b16 %v1363_v37  ;;  %v605_v39 = vmax.f32 %v509_v16, %v573_v4  ;;  %v732_v0 = vsel %vm3362_vm5, 0, %v707_v8  ;;  %v831_v41 = vrot.slane %v829_v13, 7 }
 0x1c7   : > { %v838_v22 = vrot.slane %v836_v24, 7  ;;  %2348 = vmatpush.bf16.msra.mxu2 %v2956_v15  ;;  %v1558_v35 = vunpack.c.l.b16 %v1353_v55  ;;  %v1028_v4 = vshrl.u32 %v1013_v51, 16  ;;  %v576_v8 = vmul.f32 0.2, %v516_v11  ;;  %v2955_v24 = vld [vmem:[%s3980_s3 + $0x1e8] sm:$0xff] }
 0x1c8   : > { %v1713_v40 = vpack.c.b16 %v1547_v56, %v1541_v27  ;;  %v3604_v27 = vpack.c.bf16 %v605_v39, %v605_v39  ;;  %v514_v56 = vadd.f32 %v3614_v62, %v3120_v36  ;;  %v834_v2 = vor.u32 %v832_v58, %v831_v41  ;;  %2319 = vmatpush.bf16.msra.mxu1 %v2948_v43 }
 0x1c9   : > { %v608_v58 = vmax.f32 %v516_v11, %v576_v8  ;;  %v1006_v41 = vunpack.c.l.b16 %v3396_v49 }
 0x1ca   : > { %v814_v36 = vunpack.c.l.b16 %v3604_v27  ;;  %v892_v17 = vsel %vm3362_vm5, 0, %v834_v2  ;;  %v521_v2 = vadd.f32 %v3614_v62, %v3135_v45  ;;  %v519_v45 = vadd.f32 %v3614_v62, %v3133_v44 }
 0x1cb   : > { %1324 = vrot.lane.b32.xlu0 %v3444_v50, %s2997_s24  ;;  %2349 = vmatpush.bf16.msra.mxu2 %v2955_v24 }
 0x1cc   : > { %v1215_v52 = vpop.permute.xlu1 %1214  ;;  %v3565_v54 = vpop.permute.xlu2 %1284  ;;  %v822_v13 = vpack.c.b16 %v814_v36, %v814_v36  ;;  %v2954_v36 = vld [vmem:[%s3980_s3 + $0x1e0] sm:$0xff] }
 0x1cd   : > { %v1347_v10 = vsel %vm1329_vm6, %v731_v38, %v1215_v52  ;;  %v2940_v38 = vld [vmem:[%s3980_s3 + $0x170] sm:$0xff]  ;;  %v1367_v52 = vsel %vm1329_vm6, %v3549_v34, %v3505_v53  ;;  %v815_v53 = vunpack.c.l.b16 %v3592_v6 }
 0x1ce   : > { %v1546_v26 = vunpack.c.l.b16 %v1347_v10  ;;  %2290 = vmatpush.bf16.msra.mxu3 %v2940_v38  ;;  %v839_v10 = vshll.u32 %v821_v3, 16  ;;  %v1553_v32 = vunpack.c.l.b16 %v1367_v52  ;;  %v575_v3 = vmul.f32 0.2, %v514_v56 }
 0x1cf   : > { %v3632_v5 = vpack.c.b16 %v815_v53, %v815_v53  ;;  %v1031_v38 = vshll.u32 %v1013_v51, 16  ;;  %v2947_v51 = vld [vmem:[%s3980_s3 + $0x1a8] sm:$0xff]  ;;  %v843_v53 = vshrl.u32 %v822_v13, 16  ;;  %2350 = vmatpush.bf16.msra.mxu2 %v2954_v36  ;;  %v560_v36 = vpop.f32.mrf.mxu3 }
 0x1d0   : > { %v1712_v29 = vpack.c.b16 %v1546_v26, %v1540_v59  ;;  %2320 = vmatpush.bf16.msra.mxu1 %v2947_v51 }
 0x1d1   : > { %v850_v47 = vshrl.u32 %v3632_v5, 16  ;;  %v845_v8 = vrot.slane %v843_v53, 7 }
 0x1d2   : > { %2162 = vmatmul.bf16.gmra.mxu1 %v1712_v29  ;;  %2191 = vmatmul.bf16.gmra.mxu2 %v1713_v40  ;;  %v841_v40 = vor.u32 %v839_v10, %v838_v22 }
 0x1d3   : > { %2291 = vmatpush.bf16.msra.mxu3 %v2939_v30 }
 0x1d4   : > { %v1217_v9 = vpop.permute.xlu1 %1216  ;;  %v1271_v18 = vpop.permute.xlu2 %1270  ;;  %v893_v12 = vsel %vm3362_vm5, 0, %v841_v40  ;;  %v852_v40 = vrot.slane %v850_v47, 7 }
 0x1d5   : > { %v1350_v37 = vsel %vm1329_vm6, %v732_v0, %v1217_v9  ;;  %v1023_v9 = vrot.slane %v1021_v63, 7  ;;  %v607_v0 = vmax.f32 %v514_v56, %v575_v3  ;;  %v3646_v20 = vsel %vm1329_vm6, %v3547_v28, %v1271_v18 }
 0x1d6   : > { %v1552_v59 = vunpack.c.l.b16 %v1350_v37  ;;  %v1030_v37 = vrot.slane %v1028_v4, 7  ;;  %v1521_v18 = vunpack.c.l.b16 %v3646_v20  ;;  %v853_v3 = vshll.u32 %v3632_v5, 16 }
 0x1d7   : > { %v1026_v22 = vor.u32 %v1024_v60, %v1023_v9  ;;  %v3662_v11 = vpack.c.bf16 %v607_v0, %v607_v0  ;;  %v846_v9 = vshll.u32 %v822_v13, 16  ;;  %v2946_v13 = vld [vmem:[%s3980_s3 + $0x1a0] sm:$0xff] }
 0x1d8   : > { %v1720_v33 = vpack.c.b16 %v1558_v35, %v1552_v59  ;;  %v1007_v59 = vunpack.c.l.b16 %v3484_v57  ;;  %v855_v0 = vor.u32 %v853_v3, %v852_v40  ;;  %2321 = vmatpush.bf16.msra.mxu1 %v2946_v13 }
 0x1d9   : > { %v1084_v35 = vsel %vm3362_vm5, 0, %v1026_v22 }
 0x1da   : > { %v1420_v30 = vsel %vm1329_vm6, %v1084_v35, %v3565_v54  ;;  %v1015_v43 = vpack.c.b16 %v1007_v59, %v1007_v59 }
 0x1db   : > { %v1518_v24 = vunpack.c.l.b16 %v1420_v30 }
 0x1dc   : > { %v1243_v26 = vpop.permute.xlu0 %1242  ;;  %v3624_v19 = vpop.permute.xlu2 %1288  ;;  %v1045_v53 = vshll.u32 %v1015_v43, 16 }
 0x1dd   : > { %v1369_v16 = vsel %vm1329_vm6, %v3538_v42, %v1243_v26  ;;  %v1247_v14 = vpop.permute.xlu1 %1246  ;;  %v2938_v26 = vld [vmem:[%s3980_s3 + $0x160] sm:$0xff] }
 0x1de   : > { %v1559_v29 = vunpack.c.l.b16 %v1369_v16  ;;  %v3640_v39 = vsel %vm1329_vm6, %v893_v12, %v1247_v14  ;;  %v3666_v16 = vpack.c.bf16 %v608_v58, %v608_v58  ;;  %2292 = vmatpush.bf16.msra.mxu3 %v2938_v26  ;;  %v848_v58 = vor.u32 %v846_v9, %v845_v8 }
 0x1df   : > { %v1520_v55 = vunpack.c.l.b16 %v3640_v39 }
 0x1e0   : > { %v1721_v46 = vpack.c.b16 %v1559_v29, %v1553_v32  ;;  %v1014_v29 = vpack.c.b16 %v1006_v41, %v1006_v41  ;;  %v817_v60 = vunpack.c.l.b16 %v3666_v16 }
 0x1e2   : > { %2167 = vmatmul.bf16.gmra.mxu1 %v1720_v33  ;;  %2196 = vmatmul.bf16.gmra.mxu2 %v1721_v46  ;;  %v816_v33 = vunpack.c.l.b16 %v3662_v11  ;;  %v3695_v22 = vpack.c.b16 %v817_v60, %v817_v60  ;;  %v1038_v41 = vshll.u32 %v1014_v29, 16  ;;  %v2936_v60 = vld [vmem:[%s3980_s3 + $0x150] sm:$0xff] }
 0x1e4   : > { %v1245_v23 = vpop.permute.xlu0 %1244  ;;  %v1275_v14 = vpop.permute.xlu2 %1274  ;;  %v3693_v47 = vpack.c.b16 %v816_v33, %v816_v33 }
 0x1e5   : > { %v1372_v15 = vsel %vm1329_vm6, %v892_v17, %v1245_v23  ;;  %v1269_v52 = vpop.permute.xlu1 %1268  ;;  %v1035_v17 = vshrl.u32 %v1014_v29, 16  ;;  %v578_v23 = vmul.f32 0.2, %v521_v2  ;;  %v864_v29 = vshrl.u32 %v3695_v22, 16 }
 0x1e6   : > { %v1516_v10 = vunpack.c.l.b16 %v1372_v15  ;;  %v1396_v28 = vsel %vm1329_vm6, %v3556_v48, %v1269_v52  ;;  %v1033_v48 = vor.u32 %v1031_v38, %v1030_v37  ;;  %v1042_v37 = vshrl.u32 %v1015_v43, 16  ;;  %v2937_v38 = vld [vmem:[%s3980_s3 + $0x158] sm:$0xff] }
 0x1e7   : > { %v1517_v56 = vunpack.c.l.b16 %v1396_v28  ;;  %v577_v15 = vmul.f32 0.2, %v519_v45  ;;  %2293 = vmatpush.bf16.msra.mxu3 %v2937_v38  ;;  %v1037_v52 = vrot.slane %v1035_v17, 7  ;;  %v2953_v28 = vld [vmem:[%s3980_s3 + $0x1d8] sm:$0xff]  ;;  %v866_v39 = vrot.slane %v864_v29, 7 }
 0x1e8   : > { %v1698_v63 = vpack.c.b16 %v1520_v55, %v1516_v10  ;;  %v1085_v46 = vsel %vm3362_vm5, 0, %v1033_v48  ;;  %v895_v10 = vsel %vm3362_vm5, 0, %v855_v0  ;;  %v1044_v51 = vrot.slane %v1042_v37, 7  ;;  %2351 = vmatpush.bf16.msra.mxu2 %v2953_v28 }
 0x1e9   : > { %v1699_v32 = vpack.c.b16 %v1521_v18, %v1517_v56  ;;  %v610_v56 = vmax.f32 %v521_v2, %v578_v23  ;;  %v3710_v48 = vsel %vm1329_vm6, %v3592_v6, %v1275_v14  ;;  %v609_v40 = vmax.f32 %v519_v45, %v577_v15  ;;  %v2945_v45 = vld [vmem:[%s3980_s3 + $0x198] sm:$0xff] }
 0x1ea   : > { %2210 = vmatmul.bf16.vlgmr.msrb.gmra.mxu3 %v1698_v63  ;;  %v857_v63 = vshrl.u32 %v3693_v47, 16  ;;  %v1008_v2 = vunpack.c.l.b16 %v3503_v61  ;;  %v1040_v3 = vor.u32 %v1038_v41, %v1037_v52  ;;  %v1047_v9 = vor.u32 %v1045_v53, %v1044_v51  ;;  %2322 = vmatpush.bf16.msra.mxu1 %v2945_v45 }
 0x1eb   : > { %v3720_v14 = vpack.c.bf16 %v610_v56, %v610_v56  ;;  %2294 = vmatpush.bf16.msra.mxu3 %v2936_v60  ;;  %v3748_v23 = vpack.c.bf16 %v609_v40, %v609_v40  ;;  %v867_v37 = vshll.u32 %v3695_v22, 16  ;;  %v860_v15 = vshll.u32 %v3693_v47, 16  ;;  %v2944_v47 = vld [vmem:[%s3980_s3 + $0x190] sm:$0xff] }
 0x1ec   : > { %v1287_v4 = vpop.permute.xlu0 %1286  ;;  %v3702_v59 = vpop.permute.xlu2 %1292  ;;  %v1016_v17 = vpack.c.b16 %v1008_v2, %v1008_v2  ;;  %v1087_v13 = vsel %vm3362_vm5, 0, %v1047_v9 }
 0x1ed   : > { %v1423_v12 = vsel %vm1329_vm6, %v1085_v46, %v1287_v4  ;;  %v1251_v54 = vpop.permute.xlu1 %1250  ;;  %v1533_v4 = vunpack.c.l.b16 %v3710_v48  ;;  %v819_v52 = vunpack.c.l.b16 %v3720_v14  ;;  %v869_v53 = vor.u32 %v867_v37, %v866_v39 }
 0x1ee   : > { %v1524_v5 = vunpack.c.l.b16 %v1423_v12  ;;  %v3705_v26 = vsel %vm1329_vm6, %v895_v10, %v1251_v54  ;;  %v561_v12 = vadd.f32 %v3614_v62, %v560_v36  ;;  %v1086_v62 = vsel %vm3362_vm5, 0, %v1040_v3  ;;  %2323 = vmatpush.bf16.msra.mxu1 %v2944_v47  ;;  %v2951_v3 = vld [vmem:[%s3980_s3 + $0x1c8] sm:$0xff] }
 0x1ef   : > { %v1532_v33 = vunpack.c.l.b16 %v3705_v26  ;;  %v1426_v20 = vsel %vm1329_vm6, %v1086_v62, %v3624_v19  ;;  %v1049_v41 = vshrl.u32 %v1016_v17, 16  ;;  %v818_v22 = vunpack.c.l.b16 %v3748_v23 }
 0x1f0   : > { %v1700_v44 = vpack.c.b16 %v1524_v5, %v1518_v24  ;;  %v1009_v24 = vunpack.c.l.b16 %v3549_v34  ;;  %v594_v38 = vmul.f32 0.2, %v561_v12  ;;  %v1530_v19 = vunpack.c.l.b16 %v1426_v20 }
 0x1f1   : > { %v827_v36 = vpack.c.b16 %v819_v52, %v819_v52  ;;  %v1051_v2 = vrot.slane %v1049_v41, 7  ;;  %v1010_v39 = vunpack.c.l.b16 %v3538_v42 }
 0x1f2   : > { %2239 = vmatmul.bf16.vlgmr.msrb.gmra.mxu1 %v1699_v32  ;;  %2268 = vmatmul.bf16.vlgmr.msrb.gmra.mxu2 %v1700_v44  ;;  %v894_v32 = vsel %vm3362_vm5, 0, %v848_v58  ;;  %v1017_v58 = vpack.c.b16 %v1009_v24, %v1009_v24 }
 0x1f3   : > { %v878_v24 = vshrl.u32 %v827_v36, 16 }
 0x1f4   : > { %v1249_v35 = vpop.permute.xlu0 %1248  ;;  %v1279_v10 = vpop.permute.xlu2 %1278  ;;  %v1056_v40 = vshrl.u32 %v1017_v58, 16 }
 0x1f5   : > { %v1378_v30 = vsel %vm1329_vm6, %v894_v32, %v1249_v35  ;;  %v1273_v43 = vpop.permute.xlu1 %1272  ;;  %v2935_v32 = vld [vmem:[%s3980_s3 + $0x148] sm:$0xff]  ;;  %v626_v35 = vmax.f32 %v561_v12, %v594_v38  ;;  %v3779_v60 = vsel %vm1329_vm6, %v3666_v16, %v1279_v10  ;;  %v2934_v16 = vld [vmem:[%s3980_s3 + $0x140] sm:$0xff] }
 0x1f6   : > { %v1526_v46 = vunpack.c.l.b16 %v1378_v30  ;;  %v1402_v6 = vsel %vm1329_vm6, %v3604_v27, %v1273_v43  ;;  %v1052_v30 = vshll.u32 %v1016_v17, 16  ;;  %2295 = vmatpush.bf16.msra.mxu3 %v2935_v32  ;;  %v897_v43 = vsel %vm3362_vm5, 0, %v869_v53  ;;  %v2943_v10 = vld [vmem:[%s3980_s3 + $0x188] sm:$0xff] }
 0x1f7   : > { %v1527_v8 = vunpack.c.l.b16 %v1402_v6  ;;  %v3775_v9 = vpack.c.bf16 %v626_v35, %v626_v35  ;;  %v1058_v12 = vrot.slane %v1056_v40, 7  ;;  %v1545_v38 = vunpack.c.l.b16 %v3779_v60  ;;  %2324 = vmatpush.bf16.msra.mxu1 %v2943_v10 }
 0x1f8   : > { %v3732_v54 = vpack.c.b16 %v1526_v46, %v1520_v55  ;;  %v1706_v27 = vpack.c.b16 %v1532_v33, %v1526_v46  ;;  %v2952_v55 = vld [vmem:[%s3980_s3 + $0x1d0] sm:$0xff]  ;;  %v826_v46 = vpack.c.b16 %v818_v22, %v818_v22  ;;  %v1054_v17 = vor.u32 %v1052_v30, %v1051_v2  ;;  %v2942_v30 = vld [vmem:[%s3980_s3 + $0x180] sm:$0xff] }
 0x1f9   : > { %v3739_v5 = vpack.c.b16 %v1527_v8, %v1521_v18  ;;  %v1707_v0 = vpack.c.b16 %v1533_v4, %v1527_v8  ;;  %v859_v18 = vrot.slane %v857_v63, 7  ;;  %2352 = vmatpush.bf16.msra.mxu2 %v2952_v55  ;;  %v881_v53 = vshll.u32 %v827_v36, 16 }
 0x1fa   : > { %2215 = vmatmul.bf16.gmra.mxu3 %v1706_v27  ;;  %v1059_v27 = vshll.u32 %v1017_v58, 16  ;;  %v871_v37 = vshrl.u32 %v826_v46, 16  ;;  %v1011_v58 = vunpack.c.l.b16 %v3775_v9  ;;  %v874_v32 = vshll.u32 %v826_v46, 16 }
 0x1fb   : > { %v862_v63 = vor.u32 %v860_v15, %v859_v18  ;;  %2296 = vmatpush.bf16.msra.mxu3 %v2934_v16  ;;  %2325 = vmatpush.bf16.msra.mxu1 %v2942_v30 }
 0x1fc   : > { %v1291_v44 = vpop.permute.xlu0 %1290  ;;  %v1061_v52 = vor.u32 %v1059_v27, %v1058_v12  ;;  %v1019_v22 = vpack.c.b16 %v1011_v58, %v1011_v58 }
 0x1fd   : > { %v1429_v28 = vsel %vm1329_vm6, %v1087_v13, %v1291_v44  ;;  %v1255_v56 = vpop.permute.xlu1 %1254  ;;  %v896_v8 = vsel %vm3362_vm5, 0, %v862_v63  ;;  %2353 = vmatpush.bf16.msra.mxu2 %v2951_v3  ;;  %v3790_v13 = vpop.permute.xlu2 %1296  ;;  %v873_v63 = vrot.slane %v871_v37, 7 }
 0x1fe   : > { %v1536_v51 = vunpack.c.l.b16 %v1429_v28  ;;  %v3771_v6 = vsel %vm1329_vm6, %v897_v43, %v1255_v56  ;;  %v1088_v56 = vsel %vm3362_vm5, 0, %v1054_v17  ;;  %v1089_v48 = vsel %vm3362_vm5, 0, %v1061_v52 }
 0x1ff   : > { %v1544_v55 = vunpack.c.l.b16 %v3771_v6  ;;  %v1432_v26 = vsel %vm1329_vm6, %v1088_v56, %v3702_v59  ;;  %v1070_v36 = vshrl.u32 %v1019_v22, 16  ;;  %v876_v3 = vor.u32 %v874_v32, %v873_v63 }
 0x200   : > { %v1708_v29 = vpack.c.b16 %v1536_v51, %v1530_v19  ;;  %v1018_v19 = vpack.c.b16 %v1010_v39, %v1010_v39  ;;  %v880_v51 = vrot.slane %v878_v24, 7  ;;  %v1073_v27 = vshll.u32 %v1019_v22, 16 }
 0x201   : > { %v898_v17 = vsel %vm3362_vm5, 0, %v876_v3 }
 0x202   : > { %2244 = vmatmul.bf16.gmra.mxu1 %v1707_v0  ;;  %2273 = vmatmul.bf16.gmra.mxu2 %v1708_v29  ;;  %v1542_v29 = vunpack.c.l.b16 %v1432_v26  ;;  %v1063_v40 = vshrl.u32 %v1018_v19, 16  ;;  %v883_v2 = vor.u32 %v881_v53, %v880_v51 }
 0x204   : > { %v1253_v45 = vpop.permute.xlu0 %1252  ;;  %v1065_v60 = vrot.slane %v1063_v40, 7  ;;  %v899_v46 = vsel %vm3362_vm5, 0, %v883_v2 }
 0x205   : > { %v1384_v0 = vsel %vm1329_vm6, %v896_v8, %v1253_v45  ;;  %v1277_v62 = vpop.permute.xlu1 %1276  ;;  %v1283_v8 = vpop.permute.xlu2 %1282  ;;  %v1066_v45 = vshll.u32 %v1018_v19, 16 }
 0x206   : > { %v1538_v20 = vunpack.c.l.b16 %v1384_v0  ;;  %v1408_v18 = vsel %vm1329_vm6, %v3662_v11, %v1277_v62  ;;  %v3826_v24 = vsel %vm1329_vm6, %v3720_v14, %v1283_v8  ;;  %v1072_v62 = vrot.slane %v1070_v36, 7 }
 0x207   : > { %v1539_v44 = vunpack.c.l.b16 %v1408_v18  ;;  %v1068_v18 = vor.u32 %v1066_v45, %v1065_v60  ;;  %v1557_v58 = vunpack.c.l.b16 %v3826_v24 }
 0x208   : > { %v1714_v15 = vpack.c.b16 %v1544_v55, %v1538_v20  ;;  %v3797_v11 = vpack.c.b16 %v1538_v20, %v1532_v33  ;;  %v2950_v33 = vld [vmem:[%s3980_s3 + $0x1c0] sm:$0xff]  ;;  %v1075_v52 = vor.u32 %v1073_v27, %v1072_v62 }
 0x209   : > { %v1715_v41 = vpack.c.b16 %v1545_v38, %v1539_v44  ;;  %v3804_v28 = vpack.c.b16 %v1539_v44, %v1533_v4  ;;  %2354 = vmatpush.bf16.msra.mxu2 %v2950_v33  ;;  %v1090_v19 = vsel %vm3362_vm5, 0, %v1068_v18 }
 0x20a   : > { %2220 = vmatmul.bf16.gmra.mxu3 %v1714_v15  ;;  %v1091_v51 = vsel %vm3362_vm5, 0, %v1075_v52 }
 0x20c   : > { %v1295_v4 = vpop.permute.xlu0 %1294 }
 0x20d   : > { %v1435_v47 = vsel %vm1329_vm6, %v1089_v48, %v1295_v4  ;;  %v1259_v35 = vpop.permute.xlu1 %1258  ;;  %v1313_v40 = vpop.permute.xlu2 %1312 }
 0x20e   : > { %v1548_v59 = vunpack.c.l.b16 %v1435_v47  ;;  %v3822_v12 = vsel %vm1329_vm6, %v899_v46, %v1259_v35  ;;  %v1447_v2 = vsel %vm1329_vm6, %v3396_v49, %v1313_v40 }
 0x20f   : > { %v1556_v16 = vunpack.c.l.b16 %v3822_v12  ;;  %v1531_v60 = vunpack.c.l.b16 %v1447_v2 }
 0x210   : > { %v1716_v43 = vpack.c.b16 %v1548_v59, %v1542_v29  ;;  %v3857_v29 = vld [vmem:[%s3981_s4] ss:$0 sm:$0xff] }
 0x212   : > { %2249 = vmatmul.bf16.gmra.mxu1 %v1715_v41  ;;  %2278 = vmatmul.bf16.gmra.mxu2 %v1716_v43 }
 0x214   : > { %v1257_v0 = vpop.permute.xlu0 %1256 }
 0x215   : > { %v1390_v39 = vsel %vm1329_vm6, %v898_v17, %v1257_v0  ;;  %v1281_v20 = vpop.permute.xlu1 %1280  ;;  %v1319_v62 = vpop.permute.xlu2 %1318 }
 0x216   : > { %v1550_v37 = vunpack.c.l.b16 %v1390_v39  ;;  %v1414_v44 = vsel %vm1329_vm6, %v3748_v23, %v1281_v20  ;;  %v1438_v23 = vsel %vm1329_vm6, %v1090_v19, %v3790_v13  ;;  %v1453_v7 = vsel %vm1329_vm6, %v3549_v34, %v1319_v62 }
 0x217   : > { %v1551_v15 = vunpack.c.l.b16 %v1414_v44  ;;  %v1549_v44 = vunpack.c.l.b16 %v1453_v7 }
 0x218   : > { %v1722_v14 = vpack.c.b16 %v1556_v16, %v1550_v37  ;;  %v3837_v41 = vpack.c.b16 %v1550_v37, %v1544_v55  ;;  %v1554_v55 = vunpack.c.l.b16 %v1438_v23 }
 0x219   : > { %v1723_v10 = vpack.c.b16 %v1557_v58, %v1551_v15  ;;  %v3841_v56 = vpack.c.b16 %v1551_v15, %v1545_v38 }
 0x21a   : > { %2225 = vmatmul.bf16.gmra.mxu3 %v1722_v14 }
 0x21c   : > { %v1299_v26 = vpop.permute.xlu0 %1298 }
 0x21d   : > { %v1441_v6 = vsel %vm1329_vm6, %v1091_v51, %v1299_v26  ;;  %v1311_v22 = vpop.permute.xlu1 %1310  ;;  %v1328_v26 = vpop.permute.xlu2 %1327 }
 0x21e   : > { %v1560_v33 = vunpack.c.l.b16 %v1441_v6  ;;  %v1445_v38 = vsel %vm1329_vm6, %v3377_v25, %v1311_v22 }
 0x21f   : > { %v1525_v13 = vunpack.c.l.b16 %v1445_v38 }
 0x220   : > { %v1724_v53 = vpack.c.b16 %v1560_v33, %v1554_v55 }
 0x222   : > { %2254 = vmatmul.bf16.gmra.mxu1 %v1723_v10  ;;  %2283 = vmatmul.bf16.gmra.mxu2 %v1724_v53  ;;  %v1463_v53 = vsel %vm1329_vm6, 0, %v1328_v26 }
 0x225   : > { %v1309_v48 = vpop.permute.xlu0 %1308  ;;  %v1317_v17 = vpop.permute.xlu1 %1316 }
 0x226   : > { %v1443_v4 = vsel %vm1329_vm6, %v3328_v31, %v1309_v48  ;;  %v1194_v31 = vrot.slane %v1192_v21, 7  ;;  %v1451_v50 = vsel %vm1329_vm6, %v3503_v61, %v1317_v17 }
 0x227   : > { %v1519_v63 = vunpack.c.l.b16 %v1443_v4  ;;  %v1543_v20 = vunpack.c.l.b16 %v1451_v50 }
 0x228   : > { %v2153_v32 = vpop.f32.mrf.mxu1 }
 0x229   : > { %v1701_v47 = vpack.c.b16 %v1525_v13, %v1519_v63  ;;  %v2154_v30 = vadd.f32 %v3857_v29, %v2153_v32  ;;  %v1717_v14 = vpack.c.b16 %v1549_v44, %v1543_v20 }
 0x22b   : > { %2297 = vmatmul.bf16.vlgmr.msra.gmra.mxu3 %v1701_v47 }
 0x22d   : > { %v1315_v35 = vpop.permute.xlu0 %1314 }
 0x22e   : > { %v1449_v59 = vsel %vm1329_vm6, %v3484_v57, %v1315_v35  ;;  %v1197_v57 = vor.u32 %v1195_v1, %v1194_v31 }
 0x22f   : > { %v1537_v36 = vunpack.c.l.b16 %v1449_v59 }
 0x230   : > { %v2155_v25 = vpop.f32.mrf.mxu1 }
 0x231   : > { %v2156_v21 = vadd.f32 %v3857_v29, %v2155_v25 }
 0x232   : > { %2326 = vmatmul.bf16.vlgmr.msra.gmra.mxu1 %v3732_v54  ;;  %2355 = vmatmul.bf16.vlgmr.msra.gmra.mxu2 %v3739_v5  ;;  %v1709_v54 = vpack.c.b16 %v1537_v36, %v1531_v60  ;;  %v1199_v5 = vsel %vm3362_vm5, 0, %v1197_v57 }
 0x235   : > { %v1321_v43 = vpop.permute.xlu0 %1320  ;;  %v2182_v3 = vpop.f32.mrf.mxu2 }
 0x236   : > { %v3868_v8 = vadd.f32 %v2182_v3, %v2154_v30  ;;  %v1455_v34 = vsel %vm1329_vm6, %v3538_v42, %v1321_v43  ;;  %v1563_v42 = vunpack.c.l.b16 %v1463_v53 }
 0x237   : > { %v1555_v23 = vunpack.c.l.b16 %v1455_v34 }
 0x238   : > { %v1727_v48 = vpack.c.b16 %v1563_v42, %v1557_v58 }
 0x239   : > { %v2158_v45 = vpop.f32.mrf.mxu1 }
 0x23a   : > { %v2159_v1 = vadd.f32 %v3857_v29, %v2158_v45 }
 0x23b   : > { %2302 = vmatmul.bf16.gmra.mxu3 %v1709_v54 }
 0x23d   : > { %v1325_v49 = vpop.permute.xlu0 %1324  ;;  %v2184_v46 = vpop.f32.mrf.mxu2 }
 0x23e   : > { %v1461_v12 = vsel %vm1329_vm6, %v1199_v5, %v1325_v49  ;;  %v3876_v27 = vadd.f32 %v2184_v46, %v2156_v21 }
 0x23f   : > { %v1562_v0 = vunpack.c.l.b16 %v1461_v12 }
 0x241   : > { %v1726_v39 = vpack.c.b16 %v1562_v0, %v1556_v16  ;;  %v2160_v15 = vpop.f32.mrf.mxu1 }
 0x242   : > { %2331 = vmatmul.bf16.gmra.mxu1 %v3797_v11  ;;  %2360 = vmatmul.bf16.gmra.mxu2 %v3804_v28  ;;  %v2161_v16 = vadd.f32 %v3857_v29, %v2160_v15  ;;  %v1323_v28 = vpop.permute.xlu1 %1322 }
 0x243   : > { %v1458_v10 = vsel %vm1329_vm6, %v3775_v9, %v1323_v28 }
 0x244   : > { %v1561_v55 = vunpack.c.l.b16 %v1458_v10 }
 0x245   : > { %v2187_v18 = vpop.f32.mrf.mxu2 }
 0x246   : > { %v3885_v37 = vadd.f32 %v2187_v18, %v2159_v1  ;;  %v1725_v22 = vpack.c.b16 %v1561_v55, %v1555_v23 }
 0x24b   : > { %2307 = vmatmul.bf16.gmra.mxu3 %v1717_v14 }
 0x24d   : > { %v2189_v61 = vpop.f32.mrf.mxu2 }
 0x24e   : > { %v3888_v52 = vadd.f32 %v2189_v61, %v2161_v16 }
 0x24f   : > { %v2163_v11 = vpop.f32.mrf.mxu1 }
 0x250   : > { %v2164_v19 = vadd.f32 %v3857_v29, %v2163_v11 }
 0x252   : > { %2336 = vmatmul.bf16.gmra.mxu1 %v3837_v41  ;;  %2365 = vmatmul.bf16.gmra.mxu2 %v3841_v56 }
 0x255   : > { %v2192_v51 = vpop.f32.mrf.mxu2 }
 0x256   : > { %v3897_v6 = vadd.f32 %v2192_v51, %v2164_v19  ;;  %v2392_v51 = vld [vmem:[%s3982_s5] sm:$0xff] }
 0x257   : > { %v2165_v33 = vpop.f32.mrf.mxu1 }
 0x258   : > { %v2166_v41 = vadd.f32 %v3857_v29, %v2165_v33 }
 0x25b   : > { %2312 = vmatmul.bf16.gmra.mxu3 %v1725_v22 }
 0x25d   : > { %v2194_v56 = vpop.f32.mrf.mxu2 }
 0x25e   : > { %v3901_v38 = vadd.f32 %v2194_v56, %v2166_v41 }
 0x25f   : > { %v2168_v9 = vpop.f32.mrf.mxu1 }
 0x260   : > { %v2169_v4 = vadd.f32 %v3857_v29, %v2168_v9 }
 0x262   : > { %2341 = vmatmul.bf16.gmra.mxu1 %v1726_v39  ;;  %2370 = vmatmul.bf16.gmra.mxu2 %v1727_v48 }
 0x265   : > { %v2197_v13 = vpop.f32.mrf.mxu2 }
 0x266   : > { %v3906_v63 = vadd.f32 %v2197_v13, %v2169_v4  ;;  %v2393_v4 = vld [vmem:[%s3982_s5 + $0x8] sm:$0xff] }
 0x267   : > { %v2170_v32 = vpop.f32.mrf.mxu1 }
 0x268   : > { %v2171_v47 = vadd.f32 %v3857_v29, %v2170_v32 }
 0x26d   : > { %v2199_v35 = vpop.f32.mrf.mxu2  ;;  %v2211_v40 = vpop.f32.mrf.mxu3 }
 0x26e   : > { %v3909_v59 = vadd.f32 %v2199_v35, %v2171_v47  ;;  %v2212_v39 = vadd.f32 %v2211_v40, %v3868_v8 }
 0x26f   : > { %v2240_v25 = vpop.f32.mrf.mxu1 }
 0x270   : > { %v2241_v50 = vadd.f32 %v2240_v25, %v2212_v39 }
 0x275   : > { %v2213_v31 = vpop.f32.mrf.mxu3  ;;  %v2269_v2 = vpop.f32.mrf.mxu2 }
 0x276   : > { %v2270_v1 = vadd.f32 %v2269_v2, %v2241_v50  ;;  %v2214_v44 = vadd.f32 %v2213_v31, %v3876_v27 }
 0x277   : > { %v2242_v30 = vpop.f32.mrf.mxu1 }
 0x278   : > { %v2243_v14 = vadd.f32 %v2242_v30, %v2214_v44 }
 0x27d   : > { %v2216_v24 = vpop.f32.mrf.mxu3  ;;  %v2271_v58 = vpop.f32.mrf.mxu2 }
 0x27e   : > { %v2272_v11 = vadd.f32 %v2271_v58, %v2243_v14  ;;  %v2217_v19 = vadd.f32 %v2216_v24, %v3885_v37 }
 0x27f   : > { %v2245_v36 = vpop.f32.mrf.mxu1 }
 0x280   : > { %v2246_v55 = vadd.f32 %v2245_v36, %v2217_v19  ;;  %v2394_v36 = vld [vmem:[%s3982_s5 + $0x10] sm:$0xff] }
 0x285   : > { %v2218_v43 = vpop.f32.mrf.mxu3  ;;  %v2274_v3 = vpop.f32.mrf.mxu2 }
 0x286   : > { %v2275_v22 = vadd.f32 %v2274_v3, %v2246_v55  ;;  %v2219_v9 = vadd.f32 %v2218_v43, %v3888_v52 }
 0x287   : > { %v2247_v60 = vpop.f32.mrf.mxu1 }
 0x288   : > { %v2248_v32 = vadd.f32 %v2247_v60, %v2219_v9 }
 0x28d   : > { %v2221_v57 = vpop.f32.mrf.mxu3  ;;  %v2276_v54 = vpop.f32.mrf.mxu2 }
 0x28e   : > { %v2277_v25 = vadd.f32 %v2276_v54, %v2248_v32  ;;  %v2222_v24 = vadd.f32 %v2221_v57, %v3897_v6 }
 0x28f   : > { %v2250_v5 = vpop.f32.mrf.mxu1 }
 0x290   : > { %v2251_v3 = vadd.f32 %v2250_v5, %v2222_v24 }
 0x295   : > { %v3911_v21 = vpop.f32.mrf.mxu3  ;;  %v2279_v29 = vpop.f32.mrf.mxu2 }
 0x296   : > { %v2224_v44 = vadd.f32 %v3911_v21, %v3901_v38 }
 0x297   : > { %v3913_v45 = vpop.f32.mrf.mxu1 }
 0x298   : > { %v2253_v5 = vadd.f32 %v3913_v45, %v2224_v44 }
 0x29d   : > { %v3915_v49 = vpop.f32.mrf.mxu3  ;;  %v3917_v46 = vpop.f32.mrf.mxu2 }
 0x29e   : > { %v2227_v38 = vadd.f32 %v3915_v49, %v3906_v63 }
 0x29f   : > { %v3919_v12 = vpop.f32.mrf.mxu1 }
 0x2a0   : > { %v2256_v45 = vadd.f32 %v3919_v12, %v2227_v38 }
 0x2a5   : > { %v3921_v17 = vpop.f32.mrf.mxu3  ;;  %v3923_v0 = vpop.f32.mrf.mxu2 }
 0x2a6   : > { %v2229_v63 = vadd.f32 %v3921_v17, %v3909_v59  ;;  %v2398_v17 = vld [vmem:[%s3982_s5 + $0x30] sm:$0xff] }
 0x2a7   : > { %v3925_v62 = vpop.f32.mrf.mxu1 }
 0x2a8   : > { %v2258_v12 = vadd.f32 %v3925_v62, %v2229_v63 }
 0x2ad   : > { %v3928_v7 = vpop.f32.mrf.mxu2 }
 0x2ae   : > { %v2298_v20 = vpop.f32.mrf.mxu3 }
 0x2af   : > { %v2327_v18 = vpop.f32.mrf.mxu1  ;;  %v2299_v15 = vadd.f32 %v2298_v20, %v2270_v1  ;;  %v2280_v1 = vadd.f32 %v2279_v29, %v2251_v3  ;;  %v2282_v29 = vadd.f32 %v3917_v46, %v2253_v5  ;;  %v2285_v46 = vadd.f32 %v3923_v0, %v2256_v45 }
 0x2b0   : > { %v2287_v0 = vadd.f32 %v3928_v7, %v2258_v12  ;;  %v2399_v7 = vld [vmem:[%s3982_s5 + $0x38] sm:$0xff] }
 0x2b1   : > { %v2328_v16 = vadd.f32 %v2327_v18, %v2299_v15  ;;  %v2395_v15 = vld [vmem:[%s3982_s5 + $0x18] sm:$0xff] }
 0x2b5   : > { %v2356_v61 = vpop.f32.mrf.mxu2 }
 0x2b6   : > { %v2300_v28 = vpop.f32.mrf.mxu3  ;;  %v2357_v34 = vadd.f32 %v2356_v61, %v2328_v16 }
 0x2b7   : > { %v2329_v10 = vpop.f32.mrf.mxu1  ;;  %v2301_v23 = vadd.f32 %v2300_v28, %v2272_v11 }
 0x2b8   : > { %v2376_v8 = vmul.f32 0.2, %v2357_v34 }
 0x2b9   : > { %v2330_v33 = vadd.f32 %v2329_v10, %v2301_v23  ;;  %v2396_v23 = vld [vmem:[%s3982_s5 + $0x20] sm:$0xff] }
 0x2ba   : > { %v2384_v26 = vmax.f32 %v2357_v34, %v2376_v8 }
 0x2bc   : > { %v2400_v27 = vmul.f32 %v2392_v51, %v2384_v26 }
 0x2bd   : > { %v2358_v53 = vpop.f32.mrf.mxu2 }
 0x2be   : > { %v2303_v42 = vpop.f32.mrf.mxu3  ;;  %v2359_v41 = vadd.f32 %v2358_v53, %v2330_v33  ;;  %2408 = vadd.xlane.f32.xlu1 %v2400_v27 }
 0x2bf   : > { %v2332_v56 = vpop.f32.mrf.mxu1  ;;  %v2304_v48 = vadd.f32 %v2303_v42, %v2275_v22  ;;  %v2397_v42 = vld [vmem:[%s3982_s5 + $0x28] sm:$0xff] }
 0x2c0   : > { %v2377_v37 = vmul.f32 0.2, %v2359_v41 }
 0x2c1   : > { %v2333_v47 = vadd.f32 %v2332_v56, %v2304_v48 }
 0x2c2   : > { %v2385_v13 = vmax.f32 %v2359_v41, %v2377_v37 }
 0x2c4   : > { %v2401_v35 = vmul.f32 %v2393_v4, %v2385_v13 }
 0x2c5   : > { %v2361_v40 = vpop.f32.mrf.mxu2 }
 0x2c6   : > { %v2305_v31 = vpop.f32.mrf.mxu3  ;;  %v2362_v2 = vadd.f32 %v2361_v40, %v2333_v47  ;;  %2410 = vadd.xlane.f32.xlu2 %v2401_v35 }
 0x2c7   : > { %v2334_v30 = vpop.f32.mrf.mxu1  ;;  %v2306_v58 = vadd.f32 %v2305_v31, %v2277_v25 }
 0x2c8   : > { %v2378_v52 = vmul.f32 0.2, %v2362_v2 }
 0x2c9   : > { %v2335_v39 = vadd.f32 %v2334_v30, %v2306_v58 }
 0x2ca   : > { %v2386_v43 = vmax.f32 %v2362_v2, %v2378_v52 }
 0x2cc   : > { %v2402_v60 = vmul.f32 %v2394_v36, %v2386_v43 }
 0x2cd   : > { %v2363_v50 = vpop.f32.mrf.mxu2 }
 0x2ce   : > { %v2308_v20 = vpop.f32.mrf.mxu3  ;;  %v2364_v54 = vadd.f32 %v2363_v50, %v2335_v39  ;;  %2412 = vadd.xlane.f32.xlu0 %v2402_v60 }
 0x2cf   : > { %v2337_v18 = vpop.f32.mrf.mxu1  ;;  %v2309_v6 = vadd.f32 %v2308_v20, %v2280_v1 }
 0x2d0   : > { %v2379_v57 = vmul.f32 0.2, %v2364_v54 }
 0x2d1   : > { %v2338_v16 = vadd.f32 %v2337_v18, %v2309_v6 }
 0x2d2   : > { %v2387_v14 = vmax.f32 %v2364_v54, %v2379_v57 }
 0x2d4   : > { %v2403_v61 = vmul.f32 %v2395_v15, %v2387_v14 }
 0x2d5   : > { %v2366_v11 = vpop.f32.mrf.mxu2 }
 0x2d6   : > { %v2310_v28 = vpop.f32.mrf.mxu3  ;;  %v2367_v34 = vadd.f32 %v2366_v11, %v2338_v16  ;;  %2414 = vadd.xlane.f32.xlu2 %v2403_v61  ;;  %v2437_v61 = vld [vmem:[#allocation2] sm:$0x1] }
 0x2d7   : > { %v2339_v10 = vpop.f32.mrf.mxu1  ;;  %v2311_v21 = vadd.f32 %v2310_v28, %v2282_v29 }
 0x2d8   : > { %v2380_v19 = vmul.f32 0.2, %v2367_v34 }
 0x2d9   : > { %v2340_v51 = vadd.f32 %v2339_v10, %v2311_v21 }
 0x2da   : > { %v2388_v8 = vmax.f32 %v2367_v34, %v2380_v19 }
 0x2dc   : > { %v2404_v26 = vmul.f32 %v2396_v23, %v2388_v8 }
 0x2dd   : > { %v2368_v55 = vpop.f32.mrf.mxu2 }
 0x2de   : > { %v2313_v33 = vpop.f32.mrf.mxu3  ;;  %v2369_v27 = vadd.f32 %v2368_v55, %v2340_v51  ;;  %2416 = vadd.xlane.f32.xlu1 %v2404_v26 }
 0x2df   : > { %v2342_v53 = vpop.f32.mrf.mxu1  ;;  %v2314_v49 = vadd.f32 %v2313_v33, %v2285_v46 }
 0x2e0   : > { %v2381_v22 = vmul.f32 0.2, %v2369_v27 }
 0x2e1   : > { %v2343_v56 = vadd.f32 %v2342_v53, %v2314_v49 }
 0x2e2   : > { %v2389_v41 = vmax.f32 %v2369_v27, %v2381_v22 }
 0x2e4   : > { %v2405_v9 = vmul.f32 %v2397_v42, %v2389_v41 }
 0x2e5   : > { %v2371_v48 = vpop.f32.mrf.mxu2 }
 0x2e6   : > { %v2315_v37 = vpop.f32.mrf.mxu3  ;;  %v2372_v4 = vadd.f32 %v2371_v48, %v2343_v56  ;;  %2418 = vadd.xlane.f32.xlu2 %v2405_v9 }
 0x2e7   : > { %v2316_v13 = vadd.f32 %v2315_v37, %v2287_v0  ;;  %v2344_v59 = vpop.f32.mrf.mxu1 }
 0x2e8   : > { %v2382_v32 = vmul.f32 0.2, %v2372_v4 }
 0x2e9   : > { %v2345_v35 = vadd.f32 %v2344_v59, %v2316_v13 }
 0x2ea   : > { %v2390_v47 = vmax.f32 %v2372_v4, %v2382_v32 }
 0x2ec   : > { %v2406_v40 = vmul.f32 %v2398_v17, %v2390_v47 }
 0x2ed   : > { %v2373_v25 = vpop.f32.mrf.mxu2 }
 0x2ee   : > { %v2374_v62 = vadd.f32 %v2373_v25, %v2345_v35  ;;  %2420 = vadd.xlane.f32.xlu0 %v2406_v40 }
 0x2f0   : > { %v2383_v31 = vmul.f32 0.2, %v2374_v62 }
 0x2f2   : > { %v2391_v2 = vmax.f32 %v2374_v62, %v2383_v31 }
 0x2f4   : > { %v2407_v30 = vmul.f32 %v2399_v7, %v2391_v2 }
 0x2f6   : > { %2422 = vadd.xlane.f32.xlu1 %v2407_v30 }
 0x331   : > { %v2409_v58 = vpop.xlane.xlu1 %2408 }
 0x339   : > { %v2411_v24 = vpop.xlane.xlu2 %2410 }
 0x33a   : > { %v2424_v43 = vadd.f32 %v2411_v24, %v2409_v58 }
 0x341   : > { %v2413_v36 = vpop.xlane.xlu0 %2412 }
 0x342   : > { %v2425_v3 = vadd.f32 %v2424_v43, %v2413_v36 }
 0x349   : > { %v2415_v52 = vpop.xlane.xlu2 %2414 }
 0x34a   : > { %v2426_v60 = vadd.f32 %v2425_v3, %v2415_v52 }
 0x351   : > { %v2417_v39 = vpop.xlane.xlu1 %2416 }
 0x352   : > { %v2427_v1 = vadd.f32 %v2426_v60, %v2417_v39 }
 0x359   : > { %v2419_v50 = vpop.xlane.xlu2 %2418 }
 0x35a   : > { %v2428_v54 = vadd.f32 %v2427_v1, %v2419_v50 }
 0x361   : > { %v2421_v20 = vpop.xlane.xlu0 %2420 }
 0x362   : > { %v2429_v18 = vadd.f32 %v2428_v54, %v2421_v20 }
 0x369   : > { %v2423_v44 = vpop.xlane.xlu1 %2422 }
 0x36a   : > { %v2430_v6 = vadd.f32 %v2429_v18, %v2423_v44 }
 0x36c   : > { %v2431_v57 = vrot.slane %v2430_v6, 4 }
 0x36e   : > { %v2432_v15 = vadd.f32 %v2431_v57, %v2430_v6 }
 0x370   : > { %v2433_v14 = vrot.slane %v2432_v15, 2 }
 0x372   : > { %v2434_v5 = vadd.f32 %v2433_v14, %v2432_v15 }
 0x374   : > { %v2435_v16 = vrot.slane %v2434_v5, 1 }
 0x376   : > { %v2436_v11 = vadd.f32 %v2435_v16, %v2434_v5 }
 0x378   : > { %v2438_v29 = vadd.f32 %v2437_v61, %v2436_v11 }
 0x37a   : > { %v2866_v28 = vmul.f32 -1.442695, %v2438_v29 }
 0x37c   : > { %2983 = vpow2.f32 %v2866_v28 }
 0x382   : > { %v2984_v34 = vpop.eup %2983 }
 0x383   : > { %v2442_v10 = vadd.f32 1.0, %v2984_v34 }
 0x385   : > { %2985 = vrcp.f32 %v2442_v10  ;;  %v2454_v23 = vand.u32 2147483648, %v2442_v10  ;;  %v2452_v45 = vand.u32 2147483647, %v2442_v10  ;;  %vm2448_vm8 = vweird.f32 %v2442_v10 }
 0x387   : > { %v2455_v26 = vor.u32 1.1754944e-38, %v2454_v23  ;;  %vm2453_vm11 = vcmp.eq.f32.partialorder %v2452_v45, 8.507059e+37 }
 0x38b   : > { %v2986_v38 = vpop.eup %2985 }
 0x38c   : > { %v2444_v21 = vmul.f32 %v2986_v38, %v2442_v10  ;;  %vm2449_vm7 = vweird.f32 %v2986_v38 }
 0x38d   : > { %vm2450_vm10 = vmor %vm2448_vm8, %vm2449_vm7 }
 0x38e   : > { %v2445_v19 = vsub.f32 1.0, %v2444_v21 }
 0x390   : > { %v2446_v8 = vmul.f32 %v2986_v38, %v2445_v19 }
 0x392   : > { %v2447_v51 = vadd.f32 %v2986_v38, %v2446_v8 }
 0x394   : > { %v2451_v55 = vsel %vm2450_vm10, %v2986_v38, %v2447_v51 }
 0x395   : > { %v2456_v46 = vsel %vm2453_vm11, %v2455_v26, %v2451_v55 }
 0x396   : > { %2459 = vst.msk [vmem:[%s276_s28] sm:$0x1] %vm2458_vm9, %v2456_v46 }
 0x397 PF: > { %s19_s26 = sadd.s32 1, %s2994_s26  }
 0x398   : > { %p16_p4 = scmp.ge.s32.totalorder %s19_s26, 4  }
 0x39a   :  { %18 = sbr.rel (!%p16_p4) target bundleno = 3 (0x3), region = 78 }

</bundles_post_ra>
